<compile_context>
chip_gen: v7x
topology: tpu7x:2x2x1
jax: 0.10.0
libtpu: 0.0.40
codegen_flags: <defaults>
</compile_context>

<pallas_src>
import functools
import math

import jax
import jax.numpy as jnp
from jax.experimental import pallas as pl
from jax.experimental.pallas import tpu as pltpu


def _custom_layernorm(x, gamma, beta, eps, d):
    # Matches the module's LayerNorm: torch .std() is unbiased (divide by d-1),
    # and eps is added to the std (not the variance).  Kept in exact f32.
    mean = jnp.mean(x, axis=-1, keepdims=True)
    diff = x - mean
    std = jnp.sqrt(jnp.sum(diff * diff, axis=-1, keepdims=True) / (d - 1))
    return gamma * diff / (std + eps) + beta


def _sa_kernel(y_ref, mask_ref,
               wq_ref, bq_ref, wk_ref, bk_ref, wv_ref, bv_ref, wm_ref, bm_ref,
               w1_ref, c1_ref, w2_ref, c2_ref,
               ln1_a_ref, ln1_b_ref, ln2_a_ref, ln2_b_ref,
               out_ref, *, num_heads, ln_eps):
    B, S, H = y_ref.shape                 # one batch block
    M = B * S
    dh = H // num_heads
    scale = 1.0 / math.sqrt(dh)
    cdt = wq_ref.dtype                    # MXU input dtype (bf16 by default, f32 optional)

    y = y_ref[...].reshape(M, H)          # f32 activations, flattened (B*S, H)
    y_c = y.astype(cdt)

    # --- Q/K/V projections: (M,H)x(H,H) MXU matmuls, bf16 inputs, f32 accumulation.
    q = jnp.dot(y_c, wq_ref[...], preferred_element_type=jnp.float32) + bq_ref[...]
    k = jnp.dot(y_c, wk_ref[...], preferred_element_type=jnp.float32) + bk_ref[...]
    v = jnp.dot(y_c, wv_ref[...], preferred_element_type=jnp.float32) + bv_ref[...]
    q = q.reshape(B, S, H)
    k = k.reshape(B, S, H)
    v = v.reshape(B, S, H)

    # --- additive key-mask bias, computed ONCE (hoisted out of the head loop).
    # (Equivalent to masked_fill for any row with at least one unmasked key.)
    bias = jnp.where(mask_ref[...] > 0.0, jnp.float32(-1e9), jnp.float32(0.0))  # (B,1,S)

    # --- multi-head attention: per-head results accumulate straight into `merged`
    #     (no lane-dim concatenate; per-head temporaries die each iteration).
    merged = jnp.zeros((M, H), dtype=jnp.float32)
    for h in range(num_heads):
        lo = h * dh
        qh = q[:, :, lo:lo + dh].astype(cdt)          # (B,S,dh)
        kh = k[:, :, lo:lo + dh].astype(cdt)
        vh = v[:, :, lo:lo + dh].astype(cdt)
        scores = jax.lax.dot_general(                 # (B,S,S) = qh @ kh^T (batched)
            qh, kh, (((2,), (2,)), ((0,), (0,))),
            preferred_element_type=jnp.float32) * scale + bias
        m = jnp.max(scores, axis=-1, keepdims=True)
        e = jnp.exp(scores - m)
        inv = pl.reciprocal(jnp.sum(e, axis=-1, keepdims=True), approx=True)  # EUP slot
        p = e * inv                                   # softmax
        head = jax.lax.dot_general(                   # (B,S,dh) = p @ vh (batched)
            p.astype(cdt), vh, (((2,), (1,)), ((0,), (0,))),
            preferred_element_type=jnp.float32)
        merged = merged + jnp.dot(head.reshape(M, dh).astype(cdt),
                                  wm_ref[lo:lo + dh, :],
                                  preferred_element_type=jnp.float32)
    merged = merged + bm_ref[...]

    # --- residual + LayerNorm1 (dropout identity in eval mode).
    y1 = _custom_layernorm(y + merged, ln1_a_ref[...], ln1_b_ref[...], ln_eps, H)

    # --- FFN: Linear -> ReLU -> Linear.
    hmid = jnp.dot(y1.astype(cdt), w1_ref[...], preferred_element_type=jnp.float32) + c1_ref[...]
    hmid = jnp.maximum(hmid, 0.0)
    ffn = jnp.dot(hmid.astype(cdt), w2_ref[...], preferred_element_type=jnp.float32) + c2_ref[...]

    # --- residual + LayerNorm2; single write of the final block.
    out = _custom_layernorm(y1 + ffn, ln2_a_ref[...], ln2_b_ref[...], ln_eps, H)
    out_ref[...] = out.reshape(B, S, H)


def sa_forward(y, y_mask, params, *, num_heads, ln_eps=1e-6,
               compute_dtype=jnp.bfloat16, batch_block=None):
    """y: (N, S, H) f32.  y_mask: (N, 1, S) f32, >0 where key position is padded.

    Linear weights are stored as (in_features, out_features), i.e. the transpose of
    torch.nn.Linear.weight, so the kernel computes x @ W + b.
    """
    N, S, H = y.shape
    FF = params["w1"].shape[1]
    assert H % num_heads == 0

    # Pick a batch block: target MXU-friendly M = batch_block*S (~256 rows), keep
    # >= 2 grid steps so both v7x TensorCores get work, and pick a divisor of N so
    # no padded edge block is needed.
    if batch_block is None:
        target_rows = 256
        want = max(1, min(N, target_rows // max(S, 1)))
        if N >= 2:
            want = min(want, max(1, N // 2))
        batch_block = 1
        for b in range(want, 0, -1):
            if N % b == 0:
                batch_block = b
                break
    assert N % batch_block == 0
    grid_n = N // batch_block

    cdt = jnp.dtype(compute_dtype)
    f32 = jnp.float32

    def as_w(x):            # matmul weights: cast ONCE here (full-rate MXU, half VMEM)
        return x.astype(cdt)

    def as_row(x, d):       # biases / LN params: stay f32, shaped (1, d)
        return x.reshape(1, d).astype(f32)

    operands = (
        y.astype(f32), y_mask.astype(f32),
        as_w(params["wq"]), as_row(params["bq"], H),
        as_w(params["wk"]), as_row(params["bk"], H),
        as_w(params["wv"]), as_row(params["bv"], H),
        as_w(params["wm"]), as_row(params["bm"], H),
        as_w(params["w1"]), as_row(params["c1"], FF),
        as_w(params["w2"]), as_row(params["c2"], H),
        as_row(params["ln1_a"], H), as_row(params["ln1_b"], H),
        as_row(params["ln2_a"], H), as_row(params["ln2_b"], H),
    )

    def wspec(shp):
        # Constant index map: the block index never changes, so these stay resident
        # in VMEM across grid steps (re-DMA is skipped when the block doesn't move).
        return pl.BlockSpec(shp, lambda n: (0, 0))

    in_specs = [
        pl.BlockSpec((batch_block, S, H), lambda n: (n, 0, 0)),   # y block
        pl.BlockSpec((batch_block, 1, S), lambda n: (n, 0, 0)),   # mask block
        wspec((H, H)), wspec((1, H)),      # Wq, bq
        wspec((H, H)), wspec((1, H)),      # Wk, bk
        wspec((H, H)), wspec((1, H)),      # Wv, bv
        wspec((H, H)), wspec((1, H)),      # Wmerge, bmerge
        wspec((H, FF)), wspec((1, FF)),    # FFN W1, b1
        wspec((FF, H)), wspec((1, H)),     # FFN W2, b2
        wspec((1, H)), wspec((1, H)),      # LayerNorm1 a_2, b_2
        wspec((1, H)), wspec((1, H)),      # LayerNorm2 a_2, b_2
    ]

    kern = functools.partial(_sa_kernel, num_heads=num_heads, ln_eps=ln_eps)

    # Advisory cost estimate so XLA schedules surrounding ops sensibly.
    flops = N * (8 * S * H * H + 4 * S * S * H + 4 * S * H * FF)
    transcendentals = N * num_heads * S * (S + 1)     # exp + softmax reciprocal
    bytes_accessed = int(sum(int(a.size) * a.dtype.itemsize for a in operands)
                         + N * S * H * 4)

    # Explicit VMEM budget: resident weights (assume double-buffered), double-buffered
    # y/mask/out streams, plus in-kernel f32 intermediates — re-derived from the
    # actual shapes (so batch_block is the only knob that differs v7x vs v5e/v6e).
    rows = batch_block * S
    weight_bytes = (4 * H * H + 2 * H * FF) * cdt.itemsize + (9 * H + FF) * 4
    stream_bytes = 2 * 2 * (rows * H + batch_block * S) * 4
    interm_bytes = rows * (6 * H + 2 * FF) * 4 + 3 * batch_block * S * S * 4
    vmem_limit = int(min(100 << 20,
                         max(32 << 20,
                             2 * (2 * weight_bytes + stream_bytes + interm_bytes))))

    return pl.pallas_call(
        kern,
        grid_spec=pltpu.PrefetchScalarGridSpec(
            num_scalar_prefetch=0,
            grid=(grid_n,),
            in_specs=in_specs,
            out_specs=pl.BlockSpec((batch_block, S, H), lambda n: (n, 0, 0)),
        ),
        out_shape=jax.ShapeDtypeStruct((N, S, H), jnp.float32),
        compiler_params=pltpu.CompilerParams(
            dimension_semantics=("parallel",),
            vmem_limit_bytes=vmem_limit),
        cost_estimate=pl.CostEstimate(flops=int(flops),
                                      transcendentals=int(transcendentals),
                                      bytes_accessed=bytes_accessed),
    )(*operands)


def sa_reference(y, y_mask, params, *, num_heads, ln_eps=1e-6):
    """Pure-JAX reference mirroring the PyTorch SA forward in eval mode."""
    N, S, H = y.shape
    dh = H // num_heads

    def lin(x, w, b):
        return x @ w + b

    q = lin(y, params["wq"], params["bq"])
    k = lin(y, params["wk"], params["bk"])
    v = lin(y, params["wv"], params["bv"])

    def split(x):
        return x.reshape(N, S, num_heads, dh).transpose(0, 2, 1, 3)

    qh, kh, vh = split(q), split(k), split(v)
    scores = jnp.einsum("bhqd,bhkd->bhqk", qh, kh) / math.sqrt(dh)
    scores = jnp.where(y_mask[:, None, :, :] > 0.0, -1e9, scores)
    p = jax.nn.softmax(scores, axis=-1)
    att = jnp.einsum("bhqk,bhkd->bhqd", p, vh).transpose(0, 2, 1, 3).reshape(N, S, H)
    merged = lin(att, params["wm"], params["bm"])

    def layernorm(x, g, b):
        mean = jnp.mean(x, axis=-1, keepdims=True)
        std = jnp.sqrt(jnp.sum((x - mean) ** 2, axis=-1, keepdims=True) / (H - 1))
        return g * (x - mean) / (std + ln_eps) + b

    y1 = layernorm(y + merged, params["ln1_a"], params["ln1_b"])
    hmid = jnp.maximum(lin(y1, params["w1"], params["c1"]), 0.0)
    ffn = lin(hmid, params["w2"], params["c2"])
    return layernorm(y1 + ffn, params["ln2_a"], params["ln2_b"])


if __name__ == "__main__":
    # Small config consistent with the module: HIDDEN_SIZE=32, MULTI_HEAD=4, FF_SIZE=64.
    S, H, NH, FF = 8, 32, 4, 64

    key = jax.random.PRNGKey(0)
    keys = jax.random.split(key, 20)

    def w(k, shp, s=0.1):
        return s * jax.random.normal(k, shp, dtype=jnp.float32)

    params = dict(
        wq=w(keys[1], (H, H)), bq=w(keys[2], (H,), 0.05),
        wk=w(keys[3], (H, H)), bk=w(keys[4], (H,), 0.05),
        wv=w(keys[5], (H, H)), bv=w(keys[6], (H,), 0.05),
        wm=w(keys[7], (H, H)), bm=w(keys[8], (H,), 0.05),
        w1=w(keys[9], (H, FF)), c1=w(keys[10], (FF,), 0.05),
        w2=w(keys[11], (FF, H)), c2=w(keys[12], (H,), 0.05),
        ln1_a=1.0 + w(keys[13], (H,), 0.1), ln1_b=w(keys[14], (H,), 0.1),
        ln2_a=1.0 + w(keys[15], (H,), 0.1), ln2_b=w(keys[16], (H,), 0.1),
    )

    def make_inputs(k, N):
        yy = jax.random.normal(k, (N, S, H), dtype=jnp.float32)
        mm = jnp.zeros((N, 1, S), dtype=jnp.float32)
        mm = mm.at[N - 1, 0, S - 2:].set(1.0)   # last two key positions padded
        return yy, mm

    # 1) f32 MXU path (batch_block=1, grid of 2): tight numerical check of the algorithm.
    y2, m2 = make_inputs(keys[17], 2)
    out_f32 = sa_forward(y2, m2, params, num_heads=NH, compute_dtype=jnp.float32)
    jax.block_until_ready(out_f32)
    ref2 = sa_reference(y2, m2, params, num_heads=NH)
    assert out_f32.shape == (2, S, H)
    diff_f32 = float(jnp.max(jnp.abs(out_f32 - ref2)))
    # Approx softmax reciprocal + Mosaic f32 MXU precision.
    assert jnp.allclose(out_f32, ref2, atol=5e-3, rtol=5e-3), diff_f32

    # 2) default bf16 MXU path with batch blocking (N=8 -> batch_block=4, grid of 2).
    y8, m8 = make_inputs(keys[18], 8)
    out_bf16 = sa_forward(y8, m8, params, num_heads=NH)   # compute_dtype=bf16 default
    jax.block_until_ready(out_bf16)
    ref8 = sa_reference(y8, m8, params, num_heads=NH)
    assert out_bf16.shape == (8, S, H)
    diff_bf16 = float(jnp.max(jnp.abs(out_bf16 - ref8)))
    # bf16 MXU inputs with f32 accumulation: ~1e-2 level agreement expected.
    assert jnp.allclose(out_bf16, ref8, atol=3e-2, rtol=3e-2), diff_bf16

    print("KERNEL_OK")
</pallas_src>

<mosaic_0001>
module attributes {stable_mosaic.version = 11 : i64} {
  func.func @_sa_kernel(%arg0: i32, %arg1: memref<1x8x32xf32, #tpu.memory_space<vmem>>, %arg2: memref<1x1x8xf32, #tpu.memory_space<vmem>>, %arg3: memref<32x32xf32, #tpu.memory_space<vmem>>, %arg4: memref<1x32xf32, #tpu.memory_space<vmem>>, %arg5: memref<32x32xf32, #tpu.memory_space<vmem>>, %arg6: memref<1x32xf32, #tpu.memory_space<vmem>>, %arg7: memref<32x32xf32, #tpu.memory_space<vmem>>, %arg8: memref<1x32xf32, #tpu.memory_space<vmem>>, %arg9: memref<32x32xf32, #tpu.memory_space<vmem>>, %arg10: memref<1x32xf32, #tpu.memory_space<vmem>>, %arg11: memref<32x64xf32, #tpu.memory_space<vmem>>, %arg12: memref<1x64xf32, #tpu.memory_space<vmem>>, %arg13: memref<64x32xf32, #tpu.memory_space<vmem>>, %arg14: memref<1x32xf32, #tpu.memory_space<vmem>>, %arg15: memref<1x32xf32, #tpu.memory_space<vmem>>, %arg16: memref<1x32xf32, #tpu.memory_space<vmem>>, %arg17: memref<1x32xf32, #tpu.memory_space<vmem>>, %arg18: memref<1x32xf32, #tpu.memory_space<vmem>>, %arg19: memref<1x8x32xf32, #tpu.memory_space<vmem>>) attributes {dimension_semantics = [#tpu.dimension_semantics<parallel>], iteration_bounds = array<i64: 2>, scalar_prefetch = 0 : i64, scratch_operands = 0 : i64, tpu.core_type = #tpu.core_type<tc>, window_params = [{transform_indices = @transform_0, window_bounds = array<i64: 1, 8, 32>}, {transform_indices = @transform_1, window_bounds = array<i64: 1, 1, 8>}, {pipeline_mode = #tpu.pipeline_mode<synchronous>, transform_indices = @transform_2, window_bounds = array<i64: 32, 32>}, {pipeline_mode = #tpu.pipeline_mode<synchronous>, transform_indices = @transform_3, window_bounds = array<i64: 1, 32>}, {pipeline_mode = #tpu.pipeline_mode<synchronous>, transform_indices = @transform_4, window_bounds = array<i64: 32, 32>}, {pipeline_mode = #tpu.pipeline_mode<synchronous>, transform_indices = @transform_5, window_bounds = array<i64: 1, 32>}, {pipeline_mode = #tpu.pipeline_mode<synchronous>, transform_indices = @transform_6, window_bounds = array<i64: 32, 32>}, {pipeline_mode = #tpu.pipeline_mode<synchronous>, transform_indices = @transform_7, window_bounds = array<i64: 1, 32>}, {pipeline_mode = #tpu.pipeline_mode<synchronous>, transform_indices = @transform_8, window_bounds = array<i64: 32, 32>}, {pipeline_mode = #tpu.pipeline_mode<synchronous>, transform_indices = @transform_9, window_bounds = array<i64: 1, 32>}, {pipeline_mode = #tpu.pipeline_mode<synchronous>, transform_indices = @transform_10, window_bounds = array<i64: 32, 64>}, {pipeline_mode = #tpu.pipeline_mode<synchronous>, transform_indices = @transform_11, window_bounds = array<i64: 1, 64>}, {pipeline_mode = #tpu.pipeline_mode<synchronous>, transform_indices = @transform_12, window_bounds = array<i64: 64, 32>}, {pipeline_mode = #tpu.pipeline_mode<synchronous>, transform_indices = @transform_13, window_bounds = array<i64: 1, 32>}, {pipeline_mode = #tpu.pipeline_mode<synchronous>, transform_indices = @transform_14, window_bounds = array<i64: 1, 32>}, {pipeline_mode = #tpu.pipeline_mode<synchronous>, transform_indices = @transform_15, window_bounds = array<i64: 1, 32>}, {pipeline_mode = #tpu.pipeline_mode<synchronous>, transform_indices = @transform_16, window_bounds = array<i64: 1, 32>}, {pipeline_mode = #tpu.pipeline_mode<synchronous>, transform_indices = @transform_17, window_bounds = array<i64: 1, 32>}, {transform_indices = @transform_18, window_bounds = array<i64: 1, 8, 32>}]} {
    %c0 = arith.constant 0 : index
    %c0_0 = arith.constant 0 : index
    %c0_1 = arith.constant 0 : index
    %0 = vector.load %arg1[%c0, %c0_0, %c0_1] : memref<1x8x32xf32, #tpu.memory_space<vmem>>, vector<1x8x32xf32>
    %1 = vector.shape_cast %0 : vector<1x8x32xf32> to vector<8x32xf32>
    %c0_2 = arith.constant 0 : index
    %c0_3 = arith.constant 0 : index
    %2 = vector.load %arg3[%c0_2, %c0_3] : memref<32x32xf32, #tpu.memory_space<vmem>>, vector<32x32xf32>
    %cst = arith.constant dense<0.000000e+00> : vector<8x32xf32>
    %3 = tpu.matmul %1, %2, %cst {dimension_numbers = #tpu.dot_dimension_numbers<[1], [0], [0], [1], [0, 0, 1, 1], [], []>} : vector<8x32xf32>, vector<32x32xf32>, vector<8x32xf32> -> vector<8x32xf32>
    %c0_4 = arith.constant 0 : index
    %c0_5 = arith.constant 0 : index
    %4 = vector.load %arg4[%c0_4, %c0_5] : memref<1x32xf32, #tpu.memory_space<vmem>>, vector<1x32xf32>
    %5 = vector.broadcast %4 : vector<1x32xf32> to vector<8x32xf32>
    %6 = arith.addf %3, %5 : vector<8x32xf32>
    %c0_6 = arith.constant 0 : index
    %c0_7 = arith.constant 0 : index
    %7 = vector.load %arg5[%c0_6, %c0_7] : memref<32x32xf32, #tpu.memory_space<vmem>>, vector<32x32xf32>
    %cst_8 = arith.constant dense<0.000000e+00> : vector<8x32xf32>
    %8 = tpu.matmul %1, %7, %cst_8 {dimension_numbers = #tpu.dot_dimension_numbers<[1], [0], [0], [1], [0, 0, 1, 1], [], []>} : vector<8x32xf32>, vector<32x32xf32>, vector<8x32xf32> -> vector<8x32xf32>
    %c0_9 = arith.constant 0 : index
    %c0_10 = arith.constant 0 : index
    %9 = vector.load %arg6[%c0_9, %c0_10] : memref<1x32xf32, #tpu.memory_space<vmem>>, vector<1x32xf32>
    %10 = vector.broadcast %9 : vector<1x32xf32> to vector<8x32xf32>
    %11 = arith.addf %8, %10 : vector<8x32xf32>
    %c0_11 = arith.constant 0 : index
    %c0_12 = arith.constant 0 : index
    %12 = vector.load %arg7[%c0_11, %c0_12] : memref<32x32xf32, #tpu.memory_space<vmem>>, vector<32x32xf32>
    %cst_13 = arith.constant dense<0.000000e+00> : vector<8x32xf32>
    %13 = tpu.matmul %1, %12, %cst_13 {dimension_numbers = #tpu.dot_dimension_numbers<[1], [0], [0], [1], [0, 0, 1, 1], [], []>} : vector<8x32xf32>, vector<32x32xf32>, vector<8x32xf32> -> vector<8x32xf32>
    %c0_14 = arith.constant 0 : index
    %c0_15 = arith.constant 0 : index
    %14 = vector.load %arg8[%c0_14, %c0_15] : memref<1x32xf32, #tpu.memory_space<vmem>>, vector<1x32xf32>
    %15 = vector.broadcast %14 : vector<1x32xf32> to vector<8x32xf32>
    %16 = arith.addf %13, %15 : vector<8x32xf32>
    %17 = vector.shape_cast %6 : vector<8x32xf32> to vector<1x8x32xf32>
    %18 = vector.shape_cast %11 : vector<8x32xf32> to vector<1x8x32xf32>
    %19 = vector.shape_cast %16 : vector<8x32xf32> to vector<1x8x32xf32>
    %c0_16 = arith.constant 0 : index
    %c0_17 = arith.constant 0 : index
    %c0_18 = arith.constant 0 : index
    %20 = vector.load %arg2[%c0_16, %c0_17, %c0_18] : memref<1x1x8xf32, #tpu.memory_space<vmem>>, vector<1x1x8xf32>
    %cst_19 = arith.constant 0.000000e+00 : f32
    %21 = vector.broadcast %cst_19 : f32 to vector<1x1x8xf32>
    %22 = arith.cmpf ogt, %20, %21 : vector<1x1x8xf32>
    %cst_20 = arith.constant -1.000000e+09 : f32
    %cst_21 = arith.constant 0.000000e+00 : f32
    %23 = vector.broadcast %cst_20 : f32 to vector<1x1x8xf32>
    %24 = vector.broadcast %cst_21 : f32 to vector<1x1x8xf32>
    %25 = arith.select %22, %23, %24 : vector<1x1x8xi1>, vector<1x1x8xf32>
    %cst_22 = arith.constant 0.000000e+00 : f32
    %26 = vector.broadcast %cst_22 : f32 to vector<8x32xf32>
    %27 = vector.extract_strided_slice %17 {offsets = [0, 0, 0], sizes = [1, 8, 8], strides = [1, 1, 1]} : vector<1x8x32xf32> to vector<1x8x8xf32>
    %28 = vector.extract_strided_slice %18 {offsets = [0, 0, 0], sizes = [1, 8, 8], strides = [1, 1, 1]} : vector<1x8x32xf32> to vector<1x8x8xf32>
    %29 = vector.extract_strided_slice %19 {offsets = [0, 0, 0], sizes = [1, 8, 8], strides = [1, 1, 1]} : vector<1x8x32xf32> to vector<1x8x8xf32>
    %cst_23 = arith.constant dense<0.000000e+00> : vector<1x8x8xf32>
    %30 = tpu.matmul %27, %28, %cst_23 {dimension_numbers = #tpu.dot_dimension_numbers<[2], [2], [1], [1], [0, 0, 0, 1, 1, 1], [0], [0]>} : vector<1x8x8xf32>, vector<1x8x8xf32>, vector<1x8x8xf32> -> vector<1x8x8xf32>
    %cst_24 = arith.constant 0.353553385 : f32
    %31 = vector.broadcast %cst_24 : f32 to vector<1x8x8xf32>
    %32 = arith.mulf %30, %31 : vector<1x8x8xf32>
    %33 = vector.broadcast %25 : vector<1x1x8xf32> to vector<1x8x8xf32>
    %34 = arith.addf %32, %33 : vector<1x8x8xf32>
    %cst_25 = arith.constant dense<0xFF800000> : vector<1x8xf32>
    %35 = vector.multi_reduction <maximumf>, %34, %cst_25 [2] : vector<1x8x8xf32> to vector<1x8xf32>
    %36 = vector.shape_cast %35 : vector<1x8xf32> to vector<1x8x1xf32>
    %37 = vector.broadcast %36 : vector<1x8x1xf32> to vector<1x8x8xf32>
    %38 = arith.subf %34, %37 : vector<1x8x8xf32>
    %39 = math.exp %38 : vector<1x8x8xf32>
    %cst_26 = arith.constant dense<0.000000e+00> : vector<1x8xf32>
    %40 = vector.multi_reduction <add>, %39, %cst_26 [2] : vector<1x8x8xf32> to vector<1x8xf32>
    %41 = vector.shape_cast %40 : vector<1x8xf32> to vector<1x8x1xf32>
    %42 = tpu.reciprocal %41 {approx = true} : vector<1x8x1xf32> -> vector<1x8x1xf32>
    %43 = vector.broadcast %42 : vector<1x8x1xf32> to vector<1x8x8xf32>
    %44 = arith.mulf %39, %43 : vector<1x8x8xf32>
    %cst_27 = arith.constant dense<0.000000e+00> : vector<1x8x8xf32>
    %45 = tpu.matmul %44, %29, %cst_27 {dimension_numbers = #tpu.dot_dimension_numbers<[2], [1], [1], [2], [0, 0, 0, 1, 1, 2], [0], [0]>} : vector<1x8x8xf32>, vector<1x8x8xf32>, vector<1x8x8xf32> -> vector<1x8x8xf32>
    %46 = vector.shape_cast %45 : vector<1x8x8xf32> to vector<8x8xf32>
    %c0_28 = arith.constant 0 : index
    %c0_29 = arith.constant 0 : index
    %47 = vector.load %arg9[%c0_28, %c0_29] : memref<32x32xf32, #tpu.memory_space<vmem>>, vector<8x32xf32>
    %cst_30 = arith.constant dense<0.000000e+00> : vector<8x32xf32>
    %48 = tpu.matmul %46, %47, %cst_30 {dimension_numbers = #tpu.dot_dimension_numbers<[1], [0], [0], [1], [0, 0, 1, 1], [], []>} : vector<8x8xf32>, vector<8x32xf32>, vector<8x32xf32> -> vector<8x32xf32>
    %49 = arith.addf %26, %48 : vector<8x32xf32>
    %50 = vector.extract_strided_slice %17 {offsets = [0, 0, 8], sizes = [1, 8, 8], strides = [1, 1, 1]} : vector<1x8x32xf32> to vector<1x8x8xf32>
    %51 = vector.extract_strided_slice %18 {offsets = [0, 0, 8], sizes = [1, 8, 8], strides = [1, 1, 1]} : vector<1x8x32xf32> to vector<1x8x8xf32>
    %52 = vector.extract_strided_slice %19 {offsets = [0, 0, 8], sizes = [1, 8, 8], strides = [1, 1, 1]} : vector<1x8x32xf32> to vector<1x8x8xf32>
    %cst_31 = arith.constant dense<0.000000e+00> : vector<1x8x8xf32>
    %53 = tpu.matmul %50, %51, %cst_31 {dimension_numbers = #tpu.dot_dimension_numbers<[2], [2], [1], [1], [0, 0, 0, 1, 1, 1], [0], [0]>} : vector<1x8x8xf32>, vector<1x8x8xf32>, vector<1x8x8xf32> -> vector<1x8x8xf32>
    %cst_32 = arith.constant 0.353553385 : f32
    %54 = vector.broadcast %cst_32 : f32 to vector<1x8x8xf32>
    %55 = arith.mulf %53, %54 : vector<1x8x8xf32>
    %56 = vector.broadcast %25 : vector<1x1x8xf32> to vector<1x8x8xf32>
    %57 = arith.addf %55, %56 : vector<1x8x8xf32>
    %cst_33 = arith.constant dense<0xFF800000> : vector<1x8xf32>
    %58 = vector.multi_reduction <maximumf>, %57, %cst_33 [2] : vector<1x8x8xf32> to vector<1x8xf32>
    %59 = vector.shape_cast %58 : vector<1x8xf32> to vector<1x8x1xf32>
    %60 = vector.broadcast %59 : vector<1x8x1xf32> to vector<1x8x8xf32>
    %61 = arith.subf %57, %60 : vector<1x8x8xf32>
    %62 = math.exp %61 : vector<1x8x8xf32>
    %cst_34 = arith.constant dense<0.000000e+00> : vector<1x8xf32>
    %63 = vector.multi_reduction <add>, %62, %cst_34 [2] : vector<1x8x8xf32> to vector<1x8xf32>
    %64 = vector.shape_cast %63 : vector<1x8xf32> to vector<1x8x1xf32>
    %65 = tpu.reciprocal %64 {approx = true} : vector<1x8x1xf32> -> vector<1x8x1xf32>
    %66 = vector.broadcast %65 : vector<1x8x1xf32> to vector<1x8x8xf32>
    %67 = arith.mulf %62, %66 : vector<1x8x8xf32>
    %cst_35 = arith.constant dense<0.000000e+00> : vector<1x8x8xf32>
    %68 = tpu.matmul %67, %52, %cst_35 {dimension_numbers = #tpu.dot_dimension_numbers<[2], [1], [1], [2], [0, 0, 0, 1, 1, 2], [0], [0]>} : vector<1x8x8xf32>, vector<1x8x8xf32>, vector<1x8x8xf32> -> vector<1x8x8xf32>
    %69 = vector.shape_cast %68 : vector<1x8x8xf32> to vector<8x8xf32>
    %c8 = arith.constant 8 : index
    %c0_36 = arith.constant 0 : index
    %70 = vector.load %arg9[%c8, %c0_36] : memref<32x32xf32, #tpu.memory_space<vmem>>, vector<8x32xf32>
    %cst_37 = arith.constant dense<0.000000e+00> : vector<8x32xf32>
    %71 = tpu.matmul %69, %70, %cst_37 {dimension_numbers = #tpu.dot_dimension_numbers<[1], [0], [0], [1], [0, 0, 1, 1], [], []>} : vector<8x8xf32>, vector<8x32xf32>, vector<8x32xf32> -> vector<8x32xf32>
    %72 = arith.addf %49, %71 : vector<8x32xf32>
    %73 = vector.extract_strided_slice %17 {offsets = [0, 0, 16], sizes = [1, 8, 8], strides = [1, 1, 1]} : vector<1x8x32xf32> to vector<1x8x8xf32>
    %74 = vector.extract_strided_slice %18 {offsets = [0, 0, 16], sizes = [1, 8, 8], strides = [1, 1, 1]} : vector<1x8x32xf32> to vector<1x8x8xf32>
    %75 = vector.extract_strided_slice %19 {offsets = [0, 0, 16], sizes = [1, 8, 8], strides = [1, 1, 1]} : vector<1x8x32xf32> to vector<1x8x8xf32>
    %cst_38 = arith.constant dense<0.000000e+00> : vector<1x8x8xf32>
    %76 = tpu.matmul %73, %74, %cst_38 {dimension_numbers = #tpu.dot_dimension_numbers<[2], [2], [1], [1], [0, 0, 0, 1, 1, 1], [0], [0]>} : vector<1x8x8xf32>, vector<1x8x8xf32>, vector<1x8x8xf32> -> vector<1x8x8xf32>
    %cst_39 = arith.constant 0.353553385 : f32
    %77 = vector.broadcast %cst_39 : f32 to vector<1x8x8xf32>
    %78 = arith.mulf %76, %77 : vector<1x8x8xf32>
    %79 = vector.broadcast %25 : vector<1x1x8xf32> to vector<1x8x8xf32>
    %80 = arith.addf %78, %79 : vector<1x8x8xf32>
    %cst_40 = arith.constant dense<0xFF800000> : vector<1x8xf32>
    %81 = vector.multi_reduction <maximumf>, %80, %cst_40 [2] : vector<1x8x8xf32> to vector<1x8xf32>
    %82 = vector.shape_cast %81 : vector<1x8xf32> to vector<1x8x1xf32>
    %83 = vector.broadcast %82 : vector<1x8x1xf32> to vector<1x8x8xf32>
    %84 = arith.subf %80, %83 : vector<1x8x8xf32>
    %85 = math.exp %84 : vector<1x8x8xf32>
    %cst_41 = arith.constant dense<0.000000e+00> : vector<1x8xf32>
    %86 = vector.multi_reduction <add>, %85, %cst_41 [2] : vector<1x8x8xf32> to vector<1x8xf32>
    %87 = vector.shape_cast %86 : vector<1x8xf32> to vector<1x8x1xf32>
    %88 = tpu.reciprocal %87 {approx = true} : vector<1x8x1xf32> -> vector<1x8x1xf32>
    %89 = vector.broadcast %88 : vector<1x8x1xf32> to vector<1x8x8xf32>
    %90 = arith.mulf %85, %89 : vector<1x8x8xf32>
    %cst_42 = arith.constant dense<0.000000e+00> : vector<1x8x8xf32>
    %91 = tpu.matmul %90, %75, %cst_42 {dimension_numbers = #tpu.dot_dimension_numbers<[2], [1], [1], [2], [0, 0, 0, 1, 1, 2], [0], [0]>} : vector<1x8x8xf32>, vector<1x8x8xf32>, vector<1x8x8xf32> -> vector<1x8x8xf32>
    %92 = vector.shape_cast %91 : vector<1x8x8xf32> to vector<8x8xf32>
    %c16 = arith.constant 16 : index
    %c0_43 = arith.constant 0 : index
    %93 = vector.load %arg9[%c16, %c0_43] : memref<32x32xf32, #tpu.memory_space<vmem>>, vector<8x32xf32>
    %cst_44 = arith.constant dense<0.000000e+00> : vector<8x32xf32>
    %94 = tpu.matmul %92, %93, %cst_44 {dimension_numbers = #tpu.dot_dimension_numbers<[1], [0], [0], [1], [0, 0, 1, 1], [], []>} : vector<8x8xf32>, vector<8x32xf32>, vector<8x32xf32> -> vector<8x32xf32>
    %95 = arith.addf %72, %94 : vector<8x32xf32>
    %96 = vector.extract_strided_slice %17 {offsets = [0, 0, 24], sizes = [1, 8, 8], strides = [1, 1, 1]} : vector<1x8x32xf32> to vector<1x8x8xf32>
    %97 = vector.extract_strided_slice %18 {offsets = [0, 0, 24], sizes = [1, 8, 8], strides = [1, 1, 1]} : vector<1x8x32xf32> to vector<1x8x8xf32>
    %98 = vector.extract_strided_slice %19 {offsets = [0, 0, 24], sizes = [1, 8, 8], strides = [1, 1, 1]} : vector<1x8x32xf32> to vector<1x8x8xf32>
    %cst_45 = arith.constant dense<0.000000e+00> : vector<1x8x8xf32>
    %99 = tpu.matmul %96, %97, %cst_45 {dimension_numbers = #tpu.dot_dimension_numbers<[2], [2], [1], [1], [0, 0, 0, 1, 1, 1], [0], [0]>} : vector<1x8x8xf32>, vector<1x8x8xf32>, vector<1x8x8xf32> -> vector<1x8x8xf32>
    %cst_46 = arith.constant 0.353553385 : f32
    %100 = vector.broadcast %cst_46 : f32 to vector<1x8x8xf32>
    %101 = arith.mulf %99, %100 : vector<1x8x8xf32>
    %102 = vector.broadcast %25 : vector<1x1x8xf32> to vector<1x8x8xf32>
    %103 = arith.addf %101, %102 : vector<1x8x8xf32>
    %cst_47 = arith.constant dense<0xFF800000> : vector<1x8xf32>
    %104 = vector.multi_reduction <maximumf>, %103, %cst_47 [2] : vector<1x8x8xf32> to vector<1x8xf32>
    %105 = vector.shape_cast %104 : vector<1x8xf32> to vector<1x8x1xf32>
    %106 = vector.broadcast %105 : vector<1x8x1xf32> to vector<1x8x8xf32>
    %107 = arith.subf %103, %106 : vector<1x8x8xf32>
    %108 = math.exp %107 : vector<1x8x8xf32>
    %cst_48 = arith.constant dense<0.000000e+00> : vector<1x8xf32>
    %109 = vector.multi_reduction <add>, %108, %cst_48 [2] : vector<1x8x8xf32> to vector<1x8xf32>
    %110 = vector.shape_cast %109 : vector<1x8xf32> to vector<1x8x1xf32>
    %111 = tpu.reciprocal %110 {approx = true} : vector<1x8x1xf32> -> vector<1x8x1xf32>
    %112 = vector.broadcast %111 : vector<1x8x1xf32> to vector<1x8x8xf32>
    %113 = arith.mulf %108, %112 : vector<1x8x8xf32>
    %cst_49 = arith.constant dense<0.000000e+00> : vector<1x8x8xf32>
    %114 = tpu.matmul %113, %98, %cst_49 {dimension_numbers = #tpu.dot_dimension_numbers<[2], [1], [1], [2], [0, 0, 0, 1, 1, 2], [0], [0]>} : vector<1x8x8xf32>, vector<1x8x8xf32>, vector<1x8x8xf32> -> vector<1x8x8xf32>
    %115 = vector.shape_cast %114 : vector<1x8x8xf32> to vector<8x8xf32>
    %c24 = arith.constant 24 : index
    %c0_50 = arith.constant 0 : index
    %116 = vector.load %arg9[%c24, %c0_50] : memref<32x32xf32, #tpu.memory_space<vmem>>, vector<8x32xf32>
    %cst_51 = arith.constant dense<0.000000e+00> : vector<8x32xf32>
    %117 = tpu.matmul %115, %116, %cst_51 {dimension_numbers = #tpu.dot_dimension_numbers<[1], [0], [0], [1], [0, 0, 1, 1], [], []>} : vector<8x8xf32>, vector<8x32xf32>, vector<8x32xf32> -> vector<8x32xf32>
    %118 = arith.addf %95, %117 : vector<8x32xf32>
    %c0_52 = arith.constant 0 : index
    %c0_53 = arith.constant 0 : index
    %119 = vector.load %arg10[%c0_52, %c0_53] : memref<1x32xf32, #tpu.memory_space<vmem>>, vector<1x32xf32>
    %120 = vector.broadcast %119 : vector<1x32xf32> to vector<8x32xf32>
    %121 = arith.addf %118, %120 : vector<8x32xf32>
    %122 = arith.addf %1, %121 : vector<8x32xf32>
    %c0_54 = arith.constant 0 : index
    %c0_55 = arith.constant 0 : index
    %123 = vector.load %arg15[%c0_54, %c0_55] : memref<1x32xf32, #tpu.memory_space<vmem>>, vector<1x32xf32>
    %c0_56 = arith.constant 0 : index
    %c0_57 = arith.constant 0 : index
    %124 = vector.load %arg16[%c0_56, %c0_57] : memref<1x32xf32, #tpu.memory_space<vmem>>, vector<1x32xf32>
    %cst_58 = arith.constant dense<0.000000e+00> : vector<8xf32>
    %125 = vector.multi_reduction <add>, %122, %cst_58 [1] : vector<8x32xf32> to vector<8xf32>
    %126 = vector.shape_cast %125 : vector<8xf32> to vector<8x1xf32>
    %cst_59 = arith.constant 3.200000e+01 : f32
    %127 = vector.broadcast %cst_59 : f32 to vector<8x1xf32>
    %128 = arith.divf %126, %127 : vector<8x1xf32>
    %129 = vector.broadcast %128 : vector<8x1xf32> to vector<8x32xf32>
    %130 = arith.subf %122, %129 : vector<8x32xf32>
    %131 = arith.mulf %130, %130 : vector<8x32xf32>
    %cst_60 = arith.constant dense<0.000000e+00> : vector<8xf32>
    %132 = vector.multi_reduction <add>, %131, %cst_60 [1] : vector<8x32xf32> to vector<8xf32>
    %133 = vector.shape_cast %132 : vector<8xf32> to vector<8x1xf32>
    %cst_61 = arith.constant 3.100000e+01 : f32
    %134 = vector.broadcast %cst_61 : f32 to vector<8x1xf32>
    %135 = arith.divf %133, %134 : vector<8x1xf32>
    %136 = math.sqrt %135 : vector<8x1xf32>
    %137 = vector.broadcast %123 : vector<1x32xf32> to vector<8x32xf32>
    %138 = arith.mulf %137, %130 : vector<8x32xf32>
    %cst_62 = arith.constant 9.99999997E-7 : f32
    %139 = vector.broadcast %cst_62 : f32 to vector<8x1xf32>
    %140 = arith.addf %136, %139 : vector<8x1xf32>
    %141 = vector.broadcast %140 : vector<8x1xf32> to vector<8x32xf32>
    %142 = arith.divf %138, %141 : vector<8x32xf32>
    %143 = vector.broadcast %124 : vector<1x32xf32> to vector<8x32xf32>
    %144 = arith.addf %142, %143 : vector<8x32xf32>
    %c0_63 = arith.constant 0 : index
    %c0_64 = arith.constant 0 : index
    %145 = vector.load %arg11[%c0_63, %c0_64] : memref<32x64xf32, #tpu.memory_space<vmem>>, vector<32x64xf32>
    %cst_65 = arith.constant dense<0.000000e+00> : vector<8x64xf32>
    %146 = tpu.matmul %144, %145, %cst_65 {dimension_numbers = #tpu.dot_dimension_numbers<[1], [0], [0], [1], [0, 0, 1, 1], [], []>} : vector<8x32xf32>, vector<32x64xf32>, vector<8x64xf32> -> vector<8x64xf32>
    %c0_66 = arith.constant 0 : index
    %c0_67 = arith.constant 0 : index
    %147 = vector.load %arg12[%c0_66, %c0_67] : memref<1x64xf32, #tpu.memory_space<vmem>>, vector<1x64xf32>
    %148 = vector.broadcast %147 : vector<1x64xf32> to vector<8x64xf32>
    %149 = arith.addf %146, %148 : vector<8x64xf32>
    %cst_68 = arith.constant 0.000000e+00 : f32
    %150 = vector.broadcast %cst_68 : f32 to vector<8x64xf32>
    %151 = arith.maximumf %149, %150 : vector<8x64xf32>
    %c0_69 = arith.constant 0 : index
    %c0_70 = arith.constant 0 : index
    %152 = vector.load %arg13[%c0_69, %c0_70] : memref<64x32xf32, #tpu.memory_space<vmem>>, vector<64x32xf32>
    %cst_71 = arith.constant dense<0.000000e+00> : vector<8x32xf32>
    %153 = tpu.matmul %151, %152, %cst_71 {dimension_numbers = #tpu.dot_dimension_numbers<[1], [0], [0], [1], [0, 0, 1, 1], [], []>} : vector<8x64xf32>, vector<64x32xf32>, vector<8x32xf32> -> vector<8x32xf32>
    %c0_72 = arith.constant 0 : index
    %c0_73 = arith.constant 0 : index
    %154 = vector.load %arg14[%c0_72, %c0_73] : memref<1x32xf32, #tpu.memory_space<vmem>>, vector<1x32xf32>
    %155 = vector.broadcast %154 : vector<1x32xf32> to vector<8x32xf32>
    %156 = arith.addf %153, %155 : vector<8x32xf32>
    %157 = arith.addf %144, %156 : vector<8x32xf32>
    %c0_74 = arith.constant 0 : index
    %c0_75 = arith.constant 0 : index
    %158 = vector.load %arg17[%c0_74, %c0_75] : memref<1x32xf32, #tpu.memory_space<vmem>>, vector<1x32xf32>
    %c0_76 = arith.constant 0 : index
    %c0_77 = arith.constant 0 : index
    %159 = vector.load %arg18[%c0_76, %c0_77] : memref<1x32xf32, #tpu.memory_space<vmem>>, vector<1x32xf32>
    %cst_78 = arith.constant dense<0.000000e+00> : vector<8xf32>
    %160 = vector.multi_reduction <add>, %157, %cst_78 [1] : vector<8x32xf32> to vector<8xf32>
    %161 = vector.shape_cast %160 : vector<8xf32> to vector<8x1xf32>
    %cst_79 = arith.constant 3.200000e+01 : f32
    %162 = vector.broadcast %cst_79 : f32 to vector<8x1xf32>
    %163 = arith.divf %161, %162 : vector<8x1xf32>
    %164 = vector.broadcast %163 : vector<8x1xf32> to vector<8x32xf32>
    %165 = arith.subf %157, %164 : vector<8x32xf32>
    %166 = arith.mulf %165, %165 : vector<8x32xf32>
    %cst_80 = arith.constant dense<0.000000e+00> : vector<8xf32>
    %167 = vector.multi_reduction <add>, %166, %cst_80 [1] : vector<8x32xf32> to vector<8xf32>
    %168 = vector.shape_cast %167 : vector<8xf32> to vector<8x1xf32>
    %cst_81 = arith.constant 3.100000e+01 : f32
    %169 = vector.broadcast %cst_81 : f32 to vector<8x1xf32>
    %170 = arith.divf %168, %169 : vector<8x1xf32>
    %171 = math.sqrt %170 : vector<8x1xf32>
    %172 = vector.broadcast %158 : vector<1x32xf32> to vector<8x32xf32>
    %173 = arith.mulf %172, %165 : vector<8x32xf32>
    %cst_82 = arith.constant 9.99999997E-7 : f32
    %174 = vector.broadcast %cst_82 : f32 to vector<8x1xf32>
    %175 = arith.addf %171, %174 : vector<8x1xf32>
    %176 = vector.broadcast %175 : vector<8x1xf32> to vector<8x32xf32>
    %177 = arith.divf %173, %176 : vector<8x32xf32>
    %178 = vector.broadcast %159 : vector<1x32xf32> to vector<8x32xf32>
    %179 = arith.addf %177, %178 : vector<8x32xf32>
    %180 = vector.shape_cast %179 : vector<8x32xf32> to vector<1x8x32xf32>
    %c0_83 = arith.constant 0 : index
    %c0_84 = arith.constant 0 : index
    %c0_85 = arith.constant 0 : index
    %181 = vector.load %arg19[%c0_83, %c0_84, %c0_85] : memref<1x8x32xf32, #tpu.memory_space<vmem>>, vector<1x8x32xf32>
    tpu.vector_store %arg19[%c0_83, %c0_84, %c0_85], %180 {strides = array<i32>} : memref<1x8x32xf32, #tpu.memory_space<vmem>>, vector<1x8x32xf32>,
    return
  }
  func.func @transform_0(%arg0: i32) -> (i32, i32, i32) {
    %c0_i32 = arith.constant 0 : i32
    %c0_i32_0 = arith.constant 0 : i32
    %c0_i32_1 = arith.constant 0 : i32
    return %arg0, %c0_i32, %c0_i32_0 : i32, i32, i32
  }
  func.func @transform_1(%arg0: i32) -> (i32, i32, i32) {
    %c0_i32 = arith.constant 0 : i32
    %c0_i32_0 = arith.constant 0 : i32
    %c0_i32_1 = arith.constant 0 : i32
    return %arg0, %c0_i32, %c0_i32_0 : i32, i32, i32
  }
  func.func @transform_2(%arg0: i32) -> (i32, i32) {
    %c0_i32 = arith.constant 0 : i32
    %c0_i32_0 = arith.constant 0 : i32
    %c0_i32_1 = arith.constant 0 : i32
    return %c0_i32, %c0_i32_0 : i32, i32
  }
  func.func @transform_3(%arg0: i32) -> (i32, i32) {
    %c0_i32 = arith.constant 0 : i32
    %c0_i32_0 = arith.constant 0 : i32
    %c0_i32_1 = arith.constant 0 : i32
    return %c0_i32, %c0_i32_0 : i32, i32
  }
  func.func @transform_4(%arg0: i32) -> (i32, i32) {
    %c0_i32 = arith.constant 0 : i32
    %c0_i32_0 = arith.constant 0 : i32
    %c0_i32_1 = arith.constant 0 : i32
    return %c0_i32, %c0_i32_0 : i32, i32
  }
  func.func @transform_5(%arg0: i32) -> (i32, i32) {
    %c0_i32 = arith.constant 0 : i32
    %c0_i32_0 = arith.constant 0 : i32
    %c0_i32_1 = arith.constant 0 : i32
    return %c0_i32, %c0_i32_0 : i32, i32
  }
  func.func @transform_6(%arg0: i32) -> (i32, i32) {
    %c0_i32 = arith.constant 0 : i32
    %c0_i32_0 = arith.constant 0 : i32
    %c0_i32_1 = arith.constant 0 : i32
    return %c0_i32, %c0_i32_0 : i32, i32
  }
  func.func @transform_7(%arg0: i32) -> (i32, i32) {
    %c0_i32 = arith.constant 0 : i32
    %c0_i32_0 = arith.constant 0 : i32
    %c0_i32_1 = arith.constant 0 : i32
    return %c0_i32, %c0_i32_0 : i32, i32
  }
  func.func @transform_8(%arg0: i32) -> (i32, i32) {
    %c0_i32 = arith.constant 0 : i32
    %c0_i32_0 = arith.constant 0 : i32
    %c0_i32_1 = arith.constant 0 : i32
    return %c0_i32, %c0_i32_0 : i32, i32
  }
  func.func @transform_9(%arg0: i32) -> (i32, i32) {
    %c0_i32 = arith.constant 0 : i32
    %c0_i32_0 = arith.constant 0 : i32
    %c0_i32_1 = arith.constant 0 : i32
    return %c0_i32, %c0_i32_0 : i32, i32
  }
  func.func @transform_10(%arg0: i32) -> (i32, i32) {
    %c0_i32 = arith.constant 0 : i32
    %c0_i32_0 = arith.constant 0 : i32
    %c0_i32_1 = arith.constant 0 : i32
    return %c0_i32, %c0_i32_0 : i32, i32
  }
  func.func @transform_11(%arg0: i32) -> (i32, i32) {
    %c0_i32 = arith.constant 0 : i32
    %c0_i32_0 = arith.constant 0 : i32
    %c0_i32_1 = arith.constant 0 : i32
    return %c0_i32, %c0_i32_0 : i32, i32
  }
  func.func @transform_12(%arg0: i32) -> (i32, i32) {
    %c0_i32 = arith.constant 0 : i32
    %c0_i32_0 = arith.constant 0 : i32
    %c0_i32_1 = arith.constant 0 : i32
    return %c0_i32, %c0_i32_0 : i32, i32
  }
  func.func @transform_13(%arg0: i32) -> (i32, i32) {
    %c0_i32 = arith.constant 0 : i32
    %c0_i32_0 = arith.constant 0 : i32
    %c0_i32_1 = arith.constant 0 : i32
    return %c0_i32, %c0_i32_0 : i32, i32
  }
  func.func @transform_14(%arg0: i32) -> (i32, i32) {
    %c0_i32 = arith.constant 0 : i32
    %c0_i32_0 = arith.constant 0 : i32
    %c0_i32_1 = arith.constant 0 : i32
    return %c0_i32, %c0_i32_0 : i32, i32
  }
  func.func @transform_15(%arg0: i32) -> (i32, i32) {
    %c0_i32 = arith.constant 0 : i32
    %c0_i32_0 = arith.constant 0 : i32
    %c0_i32_1 = arith.constant 0 : i32
    return %c0_i32, %c0_i32_0 : i32, i32
  }
  func.func @transform_16(%arg0: i32) -> (i32, i32) {
    %c0_i32 = arith.constant 0 : i32
    %c0_i32_0 = arith.constant 0 : i32
    %c0_i32_1 = arith.constant 0 : i32
    return %c0_i32, %c0_i32_0 : i32, i32
  }
  func.func @transform_17(%arg0: i32) -> (i32, i32) {
    %c0_i32 = arith.constant 0 : i32
    %c0_i32_0 = arith.constant 0 : i32
    %c0_i32_1 = arith.constant 0 : i32
    return %c0_i32, %c0_i32_0 : i32, i32
  }
  func.func @transform_18(%arg0: i32) -> (i32, i32, i32) {
    %c0_i32 = arith.constant 0 : i32
    %c0_i32_0 = arith.constant 0 : i32
    %c0_i32_1 = arith.constant 0 : i32
    return %arg0, %c0_i32, %c0_i32_0 : i32, i32, i32
  }
}

</mosaic_0001>

<bundles_post_ra>
// kernel: tpu_custom_call.1
= control target key start
LH: loop header
LB: loop body
LE: loop exit
PB: predicated region body
PF: predicated region fallthrough
CT: control target
= control target key end

     0   :  { %s3307_s0 = inlined_call_operand.hbm [shape: f32[2,8,32], index: 0, kind: input, shape index: {}]   ;;  %s3308_s1 = inlined_call_operand.vmem [shape: f32[2,1,8], index: 1, kind: input, shape index: {}]   ;;  %s3309_s2 = inlined_call_operand.vmem [shape: f32[32,32], index: 2, kind: input, shape index: {}]   ;;  %s3310_s3 = inlined_call_operand.vmem [shape: f32[1,32], index: 3, kind: input, shape index: {}]   ;;  %s3311_s4 = inlined_call_operand.vmem [shape: f32[32,32], index: 4, kind: input, shape index: {}]   ;;  %s3312_s5 = inlined_call_operand.vmem [shape: f32[1,32], index: 5, kind: input, shape index: {}]   ;;  %s3313_s6 = inlined_call_operand.vmem [shape: f32[32,32], index: 6, kind: input, shape index: {}]   ;;  %s3314_s7 = inlined_call_operand.vmem [shape: f32[1,32], index: 7, kind: input, shape index: {}]   ;;  %s3315_s8 = inlined_call_operand.hbm [shape: f32[32,32], index: 8, kind: input, shape index: {}]   ;;  %s3316_s9 = inlined_call_operand.vmem [shape: f32[1,32], index: 9, kind: input, shape index: {}]   ;;  %s3317_s10 = inlined_call_operand.hbm [shape: f32[32,64], index: 10, kind: input, shape index: {}]   ;;  %s3318_s11 = inlined_call_operand.vmem [shape: f32[1,64], index: 11, kind: input, shape index: {}]   ;;  %s3319_s12 = inlined_call_operand.vmem [shape: f32[64,32], index: 12, kind: input, shape index: {}]   ;;  %s3320_s13 = inlined_call_operand.vmem [shape: f32[1,32], index: 13, kind: input, shape index: {}]   ;;  %s3321_s14 = inlined_call_operand.vmem [shape: f32[1,32], index: 14, kind: input, shape index: {}]   ;;  %s3322_s15 = inlined_call_operand.vmem [shape: f32[1,32], index: 15, kind: input, shape index: {}]   ;;  %s3323_s16 = inlined_call_operand.vmem [shape: f32[1,32], index: 16, kind: input, shape index: {}]   ;;  %s3324_s17 = inlined_call_operand.vmem [shape: f32[1,32], index: 17, kind: input, shape index: {}]   ;;  %s3325_s18 = inlined_call_operand.hbm [shape: f32[2,8,32], index: 18, kind: output, shape index: {}]  }
   0x1   :  { %3335 = sst [smem:[#allocation14_spill]] %s3307_s0 }
   0x2   :  { %3336 = sst [smem:[#allocation15_spill]] %s3308_s1 }
   0x3   :  { %3337 = sst [smem:[#allocation16_spill]] %s3309_s2 }
   0x4   :  { %3338 = sst [smem:[#allocation17_spill]] %s3310_s3 }
   0x5   :  { %3339 = sst [smem:[#allocation18_spill]] %s3311_s4 }
   0x6   :  { %3340 = sst [smem:[#allocation19_spill]] %s3312_s5 }
   0x7   :  { %3341 = sst [smem:[#allocation20_spill]] %s3315_s8 }
   0x8   :  { %3342 = sst [smem:[#allocation21_spill]] %s3318_s11 }
   0x9   :  { %3343 = sst [smem:[#allocation22_spill]] %s3320_s13 }
   0xa   :  { %3344 = sst [smem:[#allocation23_spill]] %s3323_s16 }
   0xb   :  { %3345 = sst [smem:[#allocation24_spill]] %s3324_s17 }
   0xc   :  { %3346 = sst [smem:[#allocation25_spill]] %s3325_s18 }
   0xd   :  { %23 = vsyncpa [#allocation3], 0 }
   0xe   :  { %25 = vsyncpa [#allocation3 + $0x1], 0 }
   0xf   :  { %26 = vsyncpa [#allocation6], 0 }
  0x10   :  { %27 = vsyncpa [#allocation4], 0 }
  0x11   :  { %29 = vsyncpa [#allocation4 + $0x1], 0  ;;  %s2848_s27 = smov 0   ;;  %s2850_s28 = smov 0  }
  0x12   :  { %s2852_s29 = smov 0   ;;  %s2854_s30 = smov 0  }
  0x13 LB: > { %3347 = sst [smem:[#allocation12_spill]] %s2727_s27  ;;  %s2869_s0 = sadd.s32 4294967295, %s2739_s30   ;;  %s2739_s30 = sphi %s2854_s30, %s3380_s30   ;;  %s2735_s29 = sphi %s2852_s29, %s3379_s29   ;;  %s2731_s28 = sphi %s2850_s28, %s3378_s28   ;;  %s2727_s27 = sphi %s2848_s27, %s3377_s27  }
  0x14   : > { %s2225_s19 = sadd.s32 4294967294, %s2739_s30   ;;  %p55_p0 = scmp.ne.s32.totalorder %s2731_s28, %s2727_s27 }
  0x15   : > { %p3331_p1 = scmp.eq.s32.totalorder %s2869_s0, 0  ;;  %p447_p3 = scmp.eq.s32.totalorder %s2225_s19, 1 }
  0x16   : > { %p2226_p5 = scmp.ge.s32.totalorder %s2739_s30, 1  ;;  %p454_p7 = scmp.lt.s32.totalorder %s2739_s30, 3 }
  0x17   : > { %p2878_p4 = por %p3331_p1, %p55_p0  ;;  %p2883_p6 = por %p447_p3, %p55_p0 }
  0x18   : > { %p2888_p8 = pnand %p2226_p5, %p454_p7  ;;  %s2741_s22 = smov [#allocation5]  }
  0x19   : > { %s3348_s1 = scalar_select %p2878_p4, 1, 0 }
  0x1a   : > { %s3349_s20 = scalar_select %p2883_p6, 1, 0 }
  0x1b   : > { %s484_s2 = sshll.u32 %s2741_s22, 4  ;;  %p2496_p9 = pneg %p2888_p8  ;;  %s2892_s2 = int_to_ptr.vmem [resolvable:$true] %s484_s2 }
  0x1c   : > { %3350 = sst [smem:[#allocation13_spill]] %s3349_s20  ;;  %s2742_s24 = smov [#allocation7]  }
  0x1d   : > { %p2899_p11 = pnand %p2496_p9, %p3331_p1  ;;  %s500_s25 = sshll.u32 %s2742_s24, 4  ;;  %s2903_s25 = int_to_ptr.vmem [resolvable:$true] %s500_s25 }
  0x1e   : > { %s3353_s8 = sld [smem:[#allocation20_spill]] }
  0x1f   : > { %p2585_p13 = pneg %p2899_p11 }
  0x24   : > { %s2583_s22 = scalar_lea.hbm %s3353_s8, 512 }
  0x25   : > { %p2584_p12 = scmp.ne.s32.totalorder %s3353_s8, %s2583_s22  ;;  %p2590_p5 = scmp.lt.u32.totalorder %s2583_s22, %s3353_s8 }
  0x27   : > { %p2586_p0 = pnand %p2585_p13, %p2584_p12 }
  0x29   : > { %p2587_p3 = pneg %p2586_p0 }
  0x2b   : > { %p2592_p7 = pnand %p2590_p5, %p2587_p3 }
  0x2d   : > { %2595 = shalt.err (!%p2592_p7)
}
  0x2e   : > { %s2596_s24 = scalar_lea.vmem %s2892_s2, 512  ;;  %p2604_p2 = scmp.lt.s32.totalorder %s2892_s2, %s2892_s2 }
  0x2f   : > { %p2597_p9 = scmp.ne.s32.totalorder %s2892_s2, %s2596_s24  ;;  %p2605_p12 = scmp.lt.s32.totalorder %s2596_s24, %s2596_s24 }
  0x31   : > { %p2599_p10 = pnand %p2597_p9, %p2585_p13  ;;  %p2606_p0 = por %p2605_p12, %p2604_p2 }
  0x33   : > { %p2600_p1 = pneg %p2599_p10 }
  0x35   : > { %p2607_p6 = pnand %p2606_p0, %p2600_p1 }
  0x37   : > { %2610 = shalt.err (!%p2607_p6)
}
  0x38   : > { %s2743_s17 = smov 128   ;;  %s2744_s18 = smov 8  }
  0x39   : > { %2499 = dma.hbm_to_vmem [thread:$0]  (!%p2899_p11), %s3353_s8, 512, %s2892_s2, [#allocation6], %s2743_s17, %s2743_s17, %s2744_s18  }
  0x3a   : > { %s2611_s22 = scalar_lea.hbm %s3317_s10, 512 }
  0x3b   : > { %p2612_p2 = scmp.ne.s32.totalorder %s3317_s10, %s2611_s22  ;;  %p2618_p10 = scmp.lt.u32.totalorder %s2611_s22, %s3317_s10 }
  0x3d   : > { %p2614_p1 = pnand %p2612_p2, %p2585_p13 }
  0x3f   : > { %p2615_p6 = pneg %p2614_p1 }
  0x41   : > { %p2620_p3 = pnand %p2618_p10, %p2615_p6 }
  0x43   : > { %2623 = shalt.err (!%p2620_p3)
}
  0x44   : > { %s2624_s2 = scalar_lea.vmem %s2903_s25, 512  ;;  %p2632_p12 = scmp.lt.s32.totalorder %s2903_s25, %s2903_s25 }
  0x45   : > { %p2625_p5 = scmp.ne.s32.totalorder %s2903_s25, %s2624_s2  ;;  %p2633_p0 = scmp.lt.s32.totalorder %s2624_s2, %s2624_s2 }
  0x47   : > { %p2627_p7 = pnand %p2625_p5, %p2585_p13  ;;  %p2634_p2 = por %p2633_p0, %p2632_p12 }
  0x49   : > { %p2628_p9 = pneg %p2627_p7 }
  0x4b   : > { %p2635_p1 = pnand %p2634_p2, %p2628_p9 }
  0x4d   : > { %2638 = shalt.err (!%p2635_p1)
}
  0x4e   : > { %2502 = dma.hbm_to_vmem [thread:$0]  (!%p2899_p11), %s3317_s10, 512, %s2903_s25, [#allocation6], %s2743_s17, %s2743_s17, %s2744_s18  }
  0x4f   : > { %s2958_s16 = sadd.s32 1, %s2739_s30   ;;  %s42_s23 = sadd.s32 1, %s2735_s29 }
  0x50   : > { %s39_s27 = ssub.s32 %s2739_s30, %s2958_s16  ;;  %p49_p13 = scmp.ne.s32.totalorder %s2735_s29, %s2731_s28 }
  0x51   : > { %p40_p6 = scmp.eq.s32.totalorder %s39_s27, 0  ;;  %p50_p10 = scmp.eq.s32.totalorder %s2739_s30, 0 }
  0x52   : > { %p3354_p3 = scmp.eq.s32.totalorder %s2869_s0, 1  ;;  %p2513_p7 = scmp.lt.s32.totalorder %s2739_s30, 2 }
  0x53   : > { %s2974_s26 = scalar_select %p40_p6, %s2735_s29, %s42_s23  }
  0x54   : > { %p2968_p5 = por %p3354_p3, %p49_p13  ;;  %p51_p9 = por %p50_p10, %p49_p13 }
  0x55   : > { %s535_s19 = sand.u32 1, %s2735_s29   ;;  %s2231_s25 = sshll.u32 %s2739_s30, 7 }
  0x56   : > { %s3355_s20 = scalar_select %p2968_p5, 1, 0 }
  0x57   : > { %s2230_s22 = sshll.u32 %s535_s19, 3  ;;  %s3356_s24 = sld [smem:[#allocation14_spill]] }
  0x58   : > { %s539_s11 = scalar_lea.vmem [#allocation2], %s2230_s22  ;;  %p2985_p11 = pnand %p2513_p7, %p51_p9 }
  0x59   : > { %s546_s13 = sshll.u32 %s539_s11, 4  ;;  %s536_s27 = scalar_lea.sflag [#allocation3], %s535_s19  ;;  %s2983_s13 = int_to_ptr.vmem [resolvable:$true] %s546_s13 }
  0x5a   : > { %p2641_p0 = pneg %p2985_p11 }
  0x5d   : > { %s2981_s2 = scalar_lea.hbm %s3356_s24, %s2231_s25  ;;  %s2644_s17 = scalar_lea.hbm %s3356_s24, 256 }
  0x5e   : > { %s2639_s8 = scalar_lea.hbm %s2981_s2, 128  ;;  %p2645_p13 = scmp.lt.u32.totalorder %s2981_s2, %s3356_s24 }
  0x5f   : > { %p2640_p12 = scmp.ne.s32.totalorder %s2981_s2, %s2639_s8  ;;  %p2646_p6 = scmp.lt.u32.totalorder %s2644_s17, %s2639_s8 }
  0x60   : > { %p2648_p3 = scmp.lt.u32.totalorder %s2639_s8, %s2981_s2 }
  0x61   : > { %p2642_p2 = pnand %p2641_p0, %p2640_p12  ;;  %p2647_p10 = por %p2646_p6, %p2645_p13 }
  0x63   : > { %p2643_p1 = pneg %p2642_p2  ;;  %p2649_p7 = por %p2648_p3, %p2647_p10 }
  0x65   : > { %p2650_p9 = pnand %p2649_p7, %p2643_p1 }
  0x67   : > { %2653 = shalt.err (!%p2650_p9)
}
  0x68   : > { %s2654_s19 = scalar_lea.vmem %s2983_s13, 128  ;;  %s2745_s25 = smov [#allocation2]  }
  0x69   : > { %p2655_p12 = scmp.ne.s32.totalorder %s2983_s13, %s2654_s19  ;;  %s2659_s22 = sshll.u32 %s2745_s25, 4  ;;  %s2660_s22 = int_to_ptr.vmem [resolvable:$false] %s2659_s22 }
  0x6a   : > { %s2661_s18 = scalar_lea.vmem %s2660_s22, 256  ;;  %p2662_p4 = scmp.lt.s32.totalorder %s2983_s13, %s2660_s22 }
  0x6b   : > { %p2657_p2 = pnand %p2655_p12, %p2641_p0  ;;  %p2663_p13 = scmp.lt.s32.totalorder %s2661_s18, %s2654_s19 }
  0x6d   : > { %p2658_p5 = pneg %p2657_p2  ;;  %p2664_p6 = por %p2663_p13, %p2662_p4 }
  0x6f   : > { %p2665_p10 = pnand %p2664_p6, %p2658_p5 }
  0x71   : > { %2668 = shalt.err (!%p2665_p10)
}
  0x72   : > { %2506 = dma.hbm_to_vmem [thread:$0]  (!%p2985_p11), %s2981_s2, 128, %s2983_s13, %s536_s27  }
  0x73   : > { %561 = sbr.rel (%p2888_p8) target bundleno = 3813 (0xee5), region = 92  ;;  %s3017_s8 = sand.u32 (!%p2888_p8), 1, %s2731_s28  }
  0x74   : > { %s3334_s17 = sshll.u32 (!%p2888_p8), %s3017_s8, 3  ;;  %s564_s11 = scalar_lea.sflag (!%p2888_p8), [#allocation3], %s3017_s8 }
  0x75   : > { %s3023_s19 = scalar_lea.vmem (!%p2888_p8), [#allocation2], %s3334_s17  ;;  %p3358_p4 = scmp.ne.s32.totalorder (!%p2888_p8), %s3348_s1, 0 }
  0x7a   : > { %2714 = dma.done.wait (%p3358_p4), %s564_s11, 128  }
  0x7b   : > { %2716 = vsyncadd (%p3358_p4), %s564_s11, 4294967168  ;;  %p3359_p5 = scmp.eq.s32.totalorder %s2869_s0, 0 }
  0x7d   : > { %2718 = dma.done.wait (%p3359_p5), [#allocation6], 1024   ;;  %p3360_p8 = pmov %p3359_p5 }
  0x7e   : > { %v2746_v0 = vmov 0.0|0.0   ;;  %vm2747_vm0 = vmmov 0   ;;  %v2748_v1 = vmov 0.0   ;;  %s3361_s4 = sld [smem:[#allocation18_spill]]  ;;  %s3362_s25 = sld [smem:[#allocation16_spill]]  ;;  %v801_v14 = vld [vmem:[%s3313_s6] sm:$0xff]  ;;  %v964_v35 = vlaneseq }
  0x7f   : > { %2720 = vsyncadd (%p3360_p8), [#allocation6], 4294966272  ;;  %2454 = vmatprep.subr.bf16.mxu1 %v2746_v0  ;;  %2448 = vmatprep.subr.bf16.mxu0 %v2746_v0  ;;  %v802_v15 = vld [vmem:[%s3313_s6 + $0x8] sm:$0xff]  ;;  %vm646_vm1 = vcmask 261120   ;;  %v803_v18 = vld [vmem:[%s3313_s6 + $0x10] sm:$0xff]  ;;  %s3363_s5 = sld [smem:[#allocation19_spill]] }
  0x80   : > { %2344 = vmatprep.mubr.msk.f32.mxu1 %vm2747_vm0, %v2748_v1  ;;  %2333 = vmatprep.mubr.msk.f32.mxu0 %vm2747_vm0, %v2748_v1  ;;  %v3072_v16 = vld [vmem:[%s3023_s19] sm:$0xff]  ;;  %v2461_v17 = vpack.c.bf16 %v802_v15, %v801_v14  ;;  %v804_v19 = vld [vmem:[%s3313_s6 + $0x18] sm:$0xff]  ;;  %s3364_s3 = sld [smem:[#allocation17_spill]]  ;;  %vm885_vm2 = vcmask 64512   ;;  %s2749_s22 = smov 120   ;;  %v965_v37 = vshrl.u32 %v964_v35, 7 }
  0x81   : > { %v2464_v20 = vpack.c.bf16 %v804_v19, %v803_v18  ;;  %v2241_v29 = vld [vmem:[%s3314_s7] ss:$0 sm:$0xff]  ;;  %p631_p11 = scmp.lt.s32.totalorder %s2869_s0, 1  ;;  %s3365_s13 = sld [smem:[#allocation15_spill]]  ;;  %vm2001_vm6 = vcmask 523264  }
  0x82   : > { %v966_v38 = vsub.s32 0, %v965_v37  ;;  %s2750_s23 = smov 112   ;;  %s2751_s27 = smov 104  }
  0x83   : > { %s632_s1 = scalar_select %p631_p11, %s2869_s0, 1 }
  0x84   : > { %v720_v2 = vld [vmem:[%s3361_s4] sm:$0xff]  ;;  %v721_v3 = vld [vmem:[%s3361_s4 + $0x8] sm:$0xff]  ;;  %v722_v7 = vld [vmem:[%s3361_s4 + $0x10] sm:$0xff]  ;;  %s3366_s18 = sld [smem:[#allocation21_spill]]  ;;  %s3367_s21 = sld [smem:[#allocation22_spill]] }
  0x85   : > { %v635_v4 = vld [vmem:[%s3362_s25] sm:$0xff]  ;;  %v2455_v5 = vpack.c.bf16 %v721_v3, %v720_v2  ;;  %v636_v6 = vld [vmem:[%s3362_s25 + $0x8] sm:$0xff]  ;;  %v723_v8 = vld [vmem:[%s3361_s4 + $0x18] sm:$0xff]  ;;  %s3369_s17 = sld [smem:[#allocation24_spill]]  ;;  %s3371_s4 = sld [smem:[#allocation25_spill]] }
  0x86   : > { %v2449_v9 = vpack.c.bf16 %v636_v6, %v635_v4  ;;  %v637_v10 = vld [vmem:[%s3362_s25 + $0x10] sm:$0xff]  ;;  %v638_v11 = vld [vmem:[%s3362_s25 + $0x18] sm:$0xff]  ;;  %v2458_v12 = vpack.c.bf16 %v723_v8, %v722_v7  ;;  %v2239_v21 = vld [vmem:[%s3363_s5] ss:$0 sm:$0xff]  ;;  %s2114_s2 = scalar_lea.sflag [#allocation4], %s3017_s8  ;;  %p3372_p1 = scmp.ne.s32.totalorder %s3355_s20, 0 }
  0x87   : > { %2456 = vmatpush3.bf16.msra.mxu1 %v2455_v5  ;;  %v2452_v13 = vpack.c.bf16 %v638_v11, %v637_v10  ;;  %v2237_v22 = vld [vmem:[%s3364_s3] ss:$0 sm:$0xff]  ;;  %s633_s19 = scalar_lea.vmem %s3365_s13, %s632_s1  ;;  %v1223_v2 = vld [vmem:[#allocation5 + $0x8] sm:$0xff]  ;;  %v1054_v7 = vld [vmem:[#allocation5] sm:$0xff] }
  0x88   : > { %2450 = vmatpush3.bf16.msra.mxu0 %v2449_v9  ;;  %2457 = vmatprep.subr.bf16.mxu1 %v2746_v0  ;;  %v882_v36 = vld [vmem:[%s633_s19] sm:$0x1]  ;;  %s3368_s19 = sld [smem:[#allocation23_spill]] }
  0x89   : > { %2451 = vmatprep.subr.bf16.mxu0 %v2746_v0  ;;  %vm883_vm3 = vcmp.gt.f32.partialorder %v882_v36, 0.0 }
  0x8a   : > { %v884_v39 = vsel %vm883_vm3, -1e+09, %v2748_v1 }
  0x8b   : > { %2459 = vmatpush3.bf16.msra.mxu1 %v2458_v12  ;;  %v3135_v40 = vrot.slane %v884_v39, %v966_v38 }
  0x8c   : > { %2453 = vmatpush3.bf16.msra.mxu0 %v2452_v13  ;;  %2363 = vmatprep.subr.mxu1 %v2748_v1 }
  0x8d   : > { %2460 = vmatprep.subr.bf16.mxu0 %v2746_v0 }
  0x8e   : > { %2345 = vmatmul.mubr.msk.f32.vlgmr.msra.gmra.mrb[0].mxu1 %vm646_vm1, %v3072_v16 }
  0x8f   : > { %2334 = vmatmul.mubr.msk.f32.vlgmr.msra.gmra.mrb[0].mxu0 %vm646_vm1, %v3072_v16  ;;  %2365 = vmatprep.mubr.msk.f32.mxu1 %vm2747_vm0, %v2748_v1 }
  0x90   : > { %2462 = vmatpush3.bf16.msra.mxu0 %v2461_v17  ;;  %2355 = vmatprep.mubr.msk.f32.mxu0 %vm2747_vm0, %v2748_v1 }
  0x91   : > { %2463 = vmatprep.subr.bf16.mxu0 %v2746_v0 }
  0x94   : > { %2465 = vmatpush3.bf16.msra.mxu0 %v2464_v20 }
  0x95   : > { %2358 = vmatprep.subr.mxu0 %v2748_v1 }
  0x97   : > { %2356 = vmatmul.mubr.msk.f32.vlgmr.msra.gmra.mrb[2].mxu0 %vm646_vm1, %v3072_v16 }
  0x98   : > { %2360 = vmatprep.mubr.msk.f32.mxu0 %vm2747_vm0, %v2748_v1 }
 0x161   : > { %v797_v23 = vpop.f32.mrb[0].mxu1 }
 0x162   : > { %v3102_v24 = vadd.f32 %v2239_v21, %v797_v23  ;;  %v2346_v25 = vpop.f32.mrb[1].mxu1  ;;  %v716_v26 = vpop.f32.mrb[0].mxu0 }
 0x163   : > { %v3104_v27 = vadd.f32 %v2237_v22, %v716_v26  ;;  %v2335_v28 = vpop.f32.mrb[1].mxu0 }
 0x164   : > { %1057 = vrot.lane.b32.xlu0 %v3102_v24, %s2749_s22  ;;  %2359 = vmatpush3.xpose.msk.msra.mxu0 %vm885_vm2, %v3102_v24 }
 0x165   : > { %2368 = vmatprep.subr.mxu0 %v2748_v1 }
 0x167   : > { %2361 = vmatmul.mubr.msk.f32.vlgmr.msra.gmra.mrb[4].mxu0 %vm885_vm2, %v3104_v27 }
 0x168   : > { %1055 = vrot.lane.b32.xlu0 %v3104_v27, %s2749_s22  ;;  %2370 = vmatprep.mubr.msk.f32.mxu0 %vm2747_vm0, %v2748_v1 }
 0x16a   : > { %v878_v30 = vpop.f32.mrb[2].mxu0 }
 0x16b   : > { %v3120_v31 = vadd.f32 %v2241_v29, %v878_v30  ;;  %v2357_v32 = vpop.f32.mrb[3].mxu0 }
 0x16d   : > { %2364 = vmatpush3.msra.mxu1 %v3120_v31 }
 0x16e   : > { %2373 = vmatprep.subr.mxu1 %v2748_v1 }
 0x1d6   : > { %v1058_v33 = vpop.permute.xlu0 %1057 }
 0x1d7   : > { %2369 = vmatpush3.xpose.msk.msra.mxu0 %vm885_vm2, %v1058_v33 }
 0x1d8   : > { %2378 = vmatprep.subr.mxu0 %v2748_v1 }
 0x1da   : > { %v1056_v34 = vpop.permute.xlu0 %1055 }
 0x1db   : > { %2371 = vmatmul.mubr.msk.f32.vlgmr.msra.gmra.mrb[6].mxu0 %vm885_vm2, %v1056_v34 }
 0x1dc   : > { %2380 = vmatprep.mubr.msk.f32.mxu0 %vm2747_vm0, %v2748_v1  ;;  %2379 = vmatpush3.msra.mxu0 %v1223_v2 }
 0x1dd   : > { %2388 = vmatprep.subr.mxu0 %v2748_v1 }
 0x23a   : > { %v958_v41 = vpop.f32.mrb[4].mxu0 }
 0x23b   : > { %v962_v42 = vmul.f32 0.35355338, %v958_v41  ;;  %v2362_v43 = vpop.f32.mrb[5].mxu0 }
 0x23d   : > { %v969_v44 = vadd.f32 %v3135_v40, %v962_v42 }
 0x23f   : > { %v970_v45 = vsel %vm885_vm2, %v969_v44, -inf }
 0x240   : > { %971 = vmax.xlane.f32.xlu1 %v970_v45 }
 0x2ae   : > { %v1129_v46 = vpop.f32.mrb[6].mxu0 }
 0x2af   : > { %v1133_v47 = vmul.f32 0.35355338, %v1129_v46  ;;  %v2372_v48 = vpop.f32.mrb[7].mxu0 }
 0x2b1   : > { %v1134_v49 = vadd.f32 %v1133_v47, %v3135_v40 }
 0x2b3   : > { %v1135_v50 = vsel %vm885_vm2, %v1134_v49, -inf }
 0x2b4   : > { %1136 = vmax.xlane.f32.xlu1 %v1135_v50 }
 0x2cd   : > { %v972_v51 = vpop.xlane.xlu1 %971 }
 0x2ce   : > { %v973_v52 = vsub.f32 %v969_v44, %v972_v51  ;;  %v1779_v51 = vld [vmem:[#allocation5 + $0x18] sm:$0xff] }
 0x2d0   : > { %v974_v53 = vmul.f32 1.442695, %v973_v52 }
 0x2d2   : > { %2559 = vpow2.f32 %v974_v53 }
 0x2dc   : > { %v2560_v54 = vpop.eup %2559 }
 0x2dd   : > { %v976_v55 = vsel %vm885_vm2, %v2560_v54, 0.0 }
 0x2de   : > { %977 = vadd.xlane.f32.xlu0 %v976_v55 }
 0x2f4   : > { %1461 = vrot.lane.b32.xlu0 %v3120_v31, %s2750_s23 }
 0x2f8   : > { %1614 = vrot.lane.b32.xlu0 %v3102_v24, %s2751_s27 }
 0x341   : > { %v1137_v56 = vpop.xlane.xlu1 %1136 }
 0x342   : > { %v1138_v57 = vsub.f32 %v1134_v49, %v1137_v56 }
 0x344   : > { %v1139_v58 = vmul.f32 1.442695, %v1138_v57 }
 0x346   : > { %2561 = vpow2.f32 %v1139_v58 }
 0x350   : > { %v2562_v59 = vpop.eup %2561 }
 0x351   : > { %v1141_v60 = vsel %vm885_vm2, %v2562_v59, 0.0 }
 0x352   : > { %1142 = vadd.xlane.f32.xlu1 %v1141_v60  ;;  %v2259_v60 = vld [vmem:[%s3316_s9] ss:$0 sm:$0xff] }
 0x363   : > { %1147 = vrot.lane.b32.xlu1 %v3120_v31, %s2749_s22  ;;  %s2269_s22 = sshll.u32 %s2869_s0, 7  ;;  %s2752_s0 = smov [#allocation8]  }
 0x364   : > { %s3262_s5 = scalar_lea.hbm %s3371_s4, %s2269_s22 }
 0x367   : > { %1372 = vrot.lane.b32.xlu1 %v3102_v24, %s2750_s23 }
 0x36b   : > { %v978_v61 = vpop.xlane.xlu0 %977  ;;  %1370 = vrot.lane.b32.xlu1 %v3104_v27, %s2750_s23 }
 0x36c   : > { %2563 = vrcp.f32 %v978_v61 }
 0x36f   : > { %v1462_v9 = vpop.permute.xlu0 %1461 }
 0x373   : > { %v1615_v33 = vpop.permute.xlu0 %1614 }
 0x376   : > { %v2564_v62 = vpop.eup %2563 }
 0x377   : > { %v980_v63 = vmul.f32 %v2564_v62, %v2560_v54 }
 0x379   : > { %2366 = vmatmul.mubr.msk.f32.vlgmr.msra.gmra.mrb[2].mxu1 %vm885_vm2, %v980_v63 }
 0x37a   : > { %2375 = vmatprep.mubr.msk.f32.mxu1 %vm2747_vm0, %v2748_v1 }
 0x3df   : > { %v1143_v3 = vpop.xlane.xlu1 %1142 }
 0x3e0   : > { %2565 = vrcp.f32 %v1143_v3 }
 0x3e3   : > { %v1148_v4 = vpop.permute.xlu1 %1147 }
 0x3e4   : > { %2374 = vmatpush3.msra.mxu1 %v1148_v4 }
 0x3e5   : > { %2383 = vmatprep.subr.mxu1 %v2748_v1 }
 0x3e7   : > { %v1373_v11 = vpop.permute.xlu1 %1372 }
 0x3ea   : > { %v2566_v5 = vpop.eup %2565 }
 0x3eb   : > { %v1145_v6 = vmul.f32 %v2566_v5, %v2562_v59  ;;  %v1371_v14 = vpop.permute.xlu1 %1370 }
 0x3ed   : > { %2376 = vmatmul.mubr.msk.f32.vlgmr.msra.gmra.mrb[4].mxu1 %vm885_vm2, %v1145_v6 }
 0x3ee   : > { %2384 = vmatpush3.msra.mxu1 %v1054_v7  ;;  %2385 = vmatprep.mubr.msk.f32.mxu1 %vm2747_vm0, %v2748_v1 }
 0x3ef   : > { %2393 = vmatprep.subr.mxu1 %v2748_v1 }
 0x44c   : > { %v1050_v8 = vpop.f32.mrb[2].mxu1 }
 0x44d   : > { %v2367_v10 = vpop.f32.mrb[3].mxu1  ;;  %2386 = vmatmul.mubr.msk.f32.vlgmr.msra.gmra.mrb[6].mxu1 %vm885_vm2, %v1050_v8 }
 0x44e   : > { %2394 = vmatpush3.msra.mxu1 %v1462_v9  ;;  %2395 = vmatprep.mubr.msk.f32.mxu1 %vm2747_vm0, %v2748_v1  ;;  %v1902_v9 = vld [vmem:[#allocation7 + $0x8] sm:$0xff]  ;;  %v1903_v10 = vld [vmem:[#allocation7 + $0x10] sm:$0xff] }
 0x44f   : > { %2403 = vmatprep.subr.mxu1 %v2748_v1 }
 0x4c0   : > { %v1219_v12 = vpop.f32.mrb[4].mxu1 }
 0x4c1   : > { %v2377_v13 = vpop.f32.mrb[5].mxu1  ;;  %2381 = vmatmul.mubr.msk.f32.vlgmr.msra.gmra.mrb[8].mxu0 %vm885_vm2, %v1219_v12  ;;  %v1904_v12 = vld [vmem:[#allocation7 + $0x18] sm:$0xff] }
 0x4c2   : > { %2389 = vmatpush3.xpose.msk.msra.mxu0 %vm885_vm2, %v1373_v11  ;;  %2390 = vmatprep.mubr.msk.f32.mxu0 %vm2747_vm0, %v2748_v1  ;;  %v2470_v13 = vpack.c.bf16 %v1904_v12, %v1903_v10 }
 0x4c3   : > { %2398 = vmatprep.subr.mxu0 %v2748_v1 }
 0x4c5   : > { %2391 = vmatmul.mubr.msk.f32.vlgmr.msra.gmra.mrb[10].mxu0 %vm885_vm2, %v1371_v14  ;;  %v1987_v14 = vld [vmem:[%s3319_s12 + $0x8] sm:$0xff] }
 0x4c6   : > { %2400 = vmatprep.mubr.msk.f32.mxu0 %vm2747_vm0, %v2748_v1 }
 0x520   : > { %v1366_v15 = vpop.f32.mrb[6].mxu1 }
 0x521   : > { %v2387_v17 = vpop.f32.mrb[7].mxu1 }
 0x594   : > { %v1293_v18 = vpop.f32.mrb[8].mxu0 }
 0x595   : > { %v1367_v19 = vadd.f32 %v1366_v15, %v1293_v18  ;;  %v2382_v20 = vpop.f32.mrb[9].mxu0  ;;  %v1988_v15 = vld [vmem:[%s3319_s12 + $0x10] sm:$0xff]  ;;  %v1989_v18 = vld [vmem:[%s3319_s12 + $0x18] sm:$0xff] }
 0x596   : > { %v1990_v20 = vld [vmem:[%s3319_s12 + $0x20] sm:$0xff] }
 0x598   : > { %v1444_v21 = vpop.f32.mrb[10].mxu0 }
 0x599   : > { %v1448_v22 = vmul.f32 0.35355338, %v1444_v21  ;;  %v2392_v23 = vpop.f32.mrb[11].mxu0  ;;  %v1991_v21 = vld [vmem:[%s3319_s12 + $0x28] sm:$0xff] }
 0x59b   : > { %v1449_v24 = vadd.f32 %v1448_v22, %v3135_v40  ;;  %v2479_v22 = vpack.c.bf16 %v1991_v21, %v1990_v20 }
 0x59d   : > { %v1450_v25 = vsel %vm885_vm2, %v1449_v24, -inf }
 0x59e   : > { %1451 = vmax.xlane.f32.xlu1 %v1450_v25 }
 0x62b   : > { %v1452_v26 = vpop.xlane.xlu1 %1451 }
 0x62c   : > { %v1453_v28 = vsub.f32 %v1449_v24, %v1452_v26 }
 0x62e   : > { %v1454_v29 = vmul.f32 1.442695, %v1453_v28 }
 0x630   : > { %2567 = vpow2.f32 %v1454_v29 }
 0x63a   : > { %v2568_v30 = vpop.eup %2567 }
 0x63b   : > { %v1456_v32 = vsel %vm885_vm2, %v2568_v30, 0.0 }
 0x63c   : > { %1457 = vadd.xlane.f32.xlu0 %v1456_v32 }
 0x652   : > { %1612 = vrot.lane.b32.xlu0 %v3104_v27, %s2751_s27  ;;  %v1537_v27 = vld [vmem:[#allocation5 + $0x10] sm:$0xff] }
 0x653   : > { %2399 = vmatpush3.msra.mxu0 %v1537_v27  ;;  %v1992_v27 = vld [vmem:[%s3319_s12 + $0x30] sm:$0xff] }
 0x654   : > { %2408 = vmatprep.subr.mxu0 %v2748_v1 }
 0x6c9   : > { %v1458_v34 = vpop.xlane.xlu0 %1457 }
 0x6ca   : > { %2569 = vrcp.f32 %v1458_v34 }
 0x6cd   : > { %v1613_v37 = vpop.permute.xlu0 %1612 }
 0x6d4   : > { %v2570_v35 = vpop.eup %2569 }
 0x6d5   : > { %v1460_v36 = vmul.f32 %v2570_v35, %v2568_v30 }
 0x6d7   : > { %2396 = vmatmul.mubr.msk.f32.vlgmr.msra.gmra.mrb[8].mxu1 %vm885_vm2, %v1460_v36 }
 0x6d8   : > { %2404 = vmatpush3.xpose.msk.msra.mxu1 %vm885_vm2, %v1615_v33  ;;  %2405 = vmatprep.mubr.msk.f32.mxu1 %vm2747_vm0, %v2748_v1  ;;  %v2260_v33 = vld [vmem:[%s3321_s14] ss:$0 sm:$0xff] }
 0x6d9   : > { %2413 = vmatprep.subr.mxu1 %v2748_v1 }
 0x6db   : > { %2406 = vmatmul.mubr.msk.f32.vlgmr.msra.gmra.mrb[10].mxu1 %vm885_vm2, %v1613_v37 }
 0x6dc   : > { %2415 = vmatprep.mubr.msk.f32.mxu1 %vm2747_vm0, %v2748_v1  ;;  %2414 = vmatpush3.msra.mxu1 %v1779_v51 }
 0x6dd   : > { %2472 = vmatprep.subr.bf16.mxu1 %v2746_v0 }
 0x7aa   : > { %v1533_v38 = vpop.f32.mrb[8].mxu1 }
 0x7ab   : > { %v2397_v39 = vpop.f32.mrb[9].mxu1  ;;  %2401 = vmatmul.mubr.msk.f32.vlgmr.msra.gmra.mrb[12].mxu0 %vm885_vm2, %v1533_v38  ;;  %v1993_v38 = vld [vmem:[%s3319_s12 + $0x38] sm:$0xff] }
 0x7ac   : > { %2410 = vmatprep.mubr.msk.f32.mxu0 %vm2747_vm0, %v2748_v1  ;;  %v2482_v39 = vpack.c.bf16 %v1993_v38, %v1992_v27 }
 0x7ae   : > { %v1686_v41 = vpop.f32.mrb[10].mxu1 }
 0x7af   : > { %v1690_v42 = vmul.f32 0.35355338, %v1686_v41  ;;  %v2407_v43 = vpop.f32.mrb[11].mxu1  ;;  %v2262_v41 = vld [vmem:[%s3366_s18] ss:$0 sm:$0xff]  ;;  %s3370_s18 = sshll.u32 %s3017_s8, 3 }
 0x7b0   : > { %s630_s11 = scalar_lea.vmem [#allocation8], %s3370_s18 }
 0x7b1   : > { %v1691_v44 = vadd.f32 %v1690_v42, %v3135_v40  ;;  %s2127_s1 = sshll.u32 %s630_s11, 4  ;;  %s3264_s1 = int_to_ptr.vmem [resolvable:$true] %s2127_s1 }
 0x7b2   : > { %s2669_s13 = scalar_lea.vmem %s3264_s1, 128 }
 0x7b3   : > { %v1692_v45 = vsel %vm885_vm2, %v1691_v44, -inf  ;;  %p2670_p0 = scmp.ne.s32.totalorder %s3264_s1, %s2669_s13 }
 0x7b4   : > { %1693 = vmax.xlane.f32.xlu0 %v1692_v45 }
 0x7b5   : > { %p2671_p3 = pnand %p2670_p0, %p3372_p1 }
 0x7b7   : > { %p2672_p7 = pneg %p2671_p3 }
 0x841   : > { %v1694_v46 = vpop.xlane.xlu0 %1693 }
 0x842   : > { %v1695_v47 = vsub.f32 %v1691_v44, %v1694_v46  ;;  %v2264_v46 = vld [vmem:[%s3367_s21] ss:$0 sm:$0xff] }
 0x844   : > { %v1696_v48 = vmul.f32 1.442695, %v1695_v47 }
 0x846   : > { %2571 = vpow2.f32 %v1696_v48 }
 0x850   : > { %v2572_v49 = vpop.eup %2571 }
 0x851   : > { %v1698_v50 = vsel %vm885_vm2, %v2572_v49, 0.0 }
 0x852   : > { %1699 = vadd.xlane.f32.xlu1 %v1698_v50 }
 0x863   : > { %1703 = vrot.lane.b32.xlu1 %v3120_v31, %s2751_s27 }
 0x87e   : > { %v1607_v52 = vpop.f32.mrb[12].mxu0 }
 0x87f   : > { %v1611_v40 = vadd.f32 %v1607_v52, %v1367_v19  ;;  %v2402_v53 = vpop.f32.mrb[13].mxu0  ;;  %v2476_v19 = vpack.c.bf16 %v1989_v18, %v1988_v15 }
 0x8df   : > { %v1700_v54 = vpop.xlane.xlu1 %1699 }
 0x8e0   : > { %2573 = vrcp.f32 %v1700_v54 }
 0x8e3   : > { %v1704_v55 = vpop.permute.xlu1 %1703 }
 0x8e4   : > { %2409 = vmatpush3.msra.mxu0 %v1704_v55 }
 0x8e5   : > { %2466 = vmatprep.subr.bf16.mxu0 %v2746_v0 }
 0x8ea   : > { %v2574_v56 = vpop.eup %2573 }
 0x8eb   : > { %v1702_v57 = vmul.f32 %v2574_v56, %v2572_v49 }
 0x8ed   : > { %2411 = vmatmul.mubr.msk.f32.vlgmr.msra.gmra.mrb[14].mxu0 %vm885_vm2, %v1702_v57 }
 0x8ee   : > { %2426 = vmatprep.mubr.msk.f32.mxu0 %vm2747_vm0, %v2748_v1 }
 0x9c0   : > { %v1775_v31 = vpop.f32.mrb[14].mxu0 }
 0x9c1   : > { %v2412_v58 = vpop.f32.mrb[15].mxu0  ;;  %2416 = vmatmul.mubr.msk.f32.vlgmr.msra.gmra.mrb[12].mxu1 %vm885_vm2, %v1775_v31 }
 0x9c2   : > { %2445 = vmatprep.mubr.msk.f32.mxu1 %vm2747_vm0, %v2748_v1  ;;  %v1901_v1 = vld [vmem:[#allocation7] sm:$0xff] }
 0x9c3   : > { %v2467_v11 = vpack.c.bf16 %v1902_v9, %v1901_v1 }
 0x9c5   : > { %2468 = vmatpush3.bf16.msra.mxu0 %v2467_v11 }
 0x9c6   : > { %2469 = vmatprep.subr.bf16.mxu0 %v2746_v0 }
 0x9c9   : > { %2471 = vmatpush3.bf16.msra.mxu0 %v2470_v13 }
 0xa94   : > { %v1849_v59 = vpop.f32.mrb[12].mxu1 }
 0xa95   : > { %v1853_v61 = vadd.f32 %v1849_v59, %v1611_v40  ;;  %v2417_v62 = vpop.f32.mrb[13].mxu1 }
 0xa97   : > { %v1861_v63 = vadd.f32 %v2259_v60, %v1853_v61 }
 0xa99   : > { %v1862_v2 = vadd.f32 %v1861_v63, %v3072_v16  ;;  %v1986_v16 = vld [vmem:[%s3319_s12] sm:$0xff] }
 0xa9a   : > { %v2473_v17 = vpack.c.bf16 %v1987_v14, %v1986_v16  ;;  %v2266_v63 = vld [vmem:[%s3368_s19] ss:$0 sm:$0xff]  ;;  %s2673_s19 = sshll.u32 %s2752_s0, 4  ;;  %s2674_s19 = int_to_ptr.vmem [resolvable:$false] %s2673_s19 }
 0xa9b   : > { %v1865_v3 = vsel %vm646_vm1, %v1862_v2, 0.0  ;;  %s2675_s23 = scalar_lea.vmem %s2674_s19, 256  ;;  %p2676_p9 = scmp.lt.s32.totalorder %s3264_s1, %s2674_s19 }
 0xa9c   : > { %1866 = vadd.xlane.f32.xlu1 %v1865_v3  ;;  %2474 = vmatpush3.bf16.msra.mxu1 %v2473_v17  ;;  %p2677_p12 = scmp.lt.s32.totalorder %s2675_s23, %s2669_s13 }
 0xa9d   : > { %2475 = vmatprep.subr.bf16.mxu1 %v2746_v0 }
 0xa9e   : > { %p2678_p2 = por %p2677_p12, %p2676_p9 }
 0xaa0   : > { %2477 = vmatpush3.bf16.msra.mxu1 %v2476_v19  ;;  %p2679_p13 = pnand %p2678_p2, %p2672_p7 }
 0xaa1   : > { %2478 = vmatprep.subr.bf16.mxu1 %v2746_v0 }
 0xaa4   : > { %2480 = vmatpush3.bf16.msra.mxu1 %v2479_v22 }
 0xaa5   : > { %2481 = vmatprep.subr.bf16.mxu1 %v2746_v0  ;;  %v2261_v0 = vld [vmem:[%s3322_s15] ss:$0 sm:$0xff] }
 0xaa8   : > { %2483 = vmatpush3.bf16.msra.mxu1 %v2482_v39 }
 0xb29   : > { %v1867_v4 = vpop.xlane.xlu1 %1866 }
 0xb2a   : > { %v1869_v5 = vmul.f32 0.03125, %v1867_v4  ;;  %v2267_v4 = vld [vmem:[%s3369_s17] ss:$0 sm:$0xff] }
 0xb2c   : > { %v1870_v6 = vsub.f32 %v1862_v2, %v1869_v5 }
 0xb2e   : > { %v1871_v7 = vmul.f32 %v1870_v6, %v1870_v6  ;;  %v1890_v34 = vmul.f32 %v2260_v33, %v1870_v6 }
 0xb30   : > { %v1872_v8 = vsel %vm646_vm1, %v1871_v7, 0.0 }
 0xb31   : > { %1873 = vadd.xlane.f32.xlu0 %v1872_v8 }
 0xbbe   : > { %v1874_v23 = vpop.xlane.xlu0 %1873 }
 0xbbf   : > { %v1876_v24 = vmul.f32 0.032258064, %v1874_v23 }
 0xbc1   : > { %2575 = vrsqrt.f32 %v1876_v24  ;;  %vm1879_vm4 = vcmp.eq.f32.partialorder %v1876_v24, inf  ;;  %v1882_v28 = vand.u32 2147483648, %v1876_v24  ;;  %vm1881_vm5 = vcmp.eq.f32.partialorder %v1876_v24, 0.0 }
 0xbcb   : > { %v2576_v25 = vpop.eup %2575 }
 0xbcc   : > { %v1878_v26 = vmul.f32 %v2576_v25, %v1876_v24 }
 0xbce   : > { %v1880_v29 = vsel %vm1879_vm4, %v1876_v24, %v1878_v26 }
 0xbcf   : > { %v1883_v30 = vsel %vm1881_vm5, %v1882_v28, %v1880_v29 }
 0xbd0   : > { %v1891_v32 = vadd.f32 1e-06, %v1883_v30 }
 0xbd2   : > { %2577 = vrcp.f32 %v1891_v32 }
 0xbdc   : > { %v2578_v35 = vpop.eup %2577 }
 0xbdd   : > { %v1893_v36 = vmul.f32 %v2578_v35, %v1890_v34 }
 0xbdf   : > { %v1900_v37 = vadd.f32 %v2261_v0, %v1893_v36 }
 0xbe1   : > { %2427 = vmatmul.mubr.msk.f32.vlgmr.msra.gmra.mrb[16].mxu0 %vm646_vm1, %v1900_v37 }
 0xcb4   : > { %v1981_v42 = vpop.f32.mrb[16].mxu0 }
 0xcb5   : > { %v1982_v43 = vadd.f32 %v2262_v41, %v1981_v42  ;;  %v2428_v44 = vpop.f32.mrb[17].mxu0 }
 0xcb7   : > { %v1985_v45 = vmax.f32 %v1982_v43, 0.0 }
 0xcb9   : > { %2446 = vmatmul.mubr.msk.f32.vlgmr.msra.gmra.mrb[14].mxu1 %vm2001_vm6, %v1985_v45 }
 0xd8c   : > { %v2071_v47 = vpop.f32.mrb[14].mxu1 }
 0xd8d   : > { %v2072_v48 = vadd.f32 %v2264_v46, %v2071_v47  ;;  %v2447_v49 = vpop.f32.mrb[15].mxu1 }
 0xd8f   : > { %v2075_v50 = vadd.f32 %v2072_v48, %v1900_v37 }
 0xd91   : > { %v2078_v51 = vsel %vm646_vm1, %v2075_v50, 0.0 }
 0xd92   : > { %2079 = vadd.xlane.f32.xlu0 %v2078_v51 }
 0xe1f   : > { %v2080_v52 = vpop.xlane.xlu0 %2079 }
 0xe20   : > { %v2081_v40 = vmul.f32 0.03125, %v2080_v52 }
 0xe22   : > { %v2082_v53 = vsub.f32 %v2075_v50, %v2081_v40 }
 0xe24   : > { %v2083_v54 = vmul.f32 %v2082_v53, %v2082_v53  ;;  %v2101_v2 = vmul.f32 %v2266_v63, %v2082_v53 }
 0xe26   : > { %v2084_v55 = vsel %vm646_vm1, %v2083_v54, 0.0 }
 0xe27   : > { %2085 = vadd.xlane.f32.xlu0 %v2084_v55 }
 0xeb4   : > { %v2086_v56 = vpop.xlane.xlu0 %2085 }
 0xeb5   : > { %v2087_v57 = vmul.f32 0.032258064, %v2086_v56 }
 0xeb7   : > { %2579 = vrsqrt.f32 %v2087_v57  ;;  %vm2090_vm7 = vcmp.eq.f32.partialorder %v2087_v57, inf  ;;  %v2093_v59 = vand.u32 2147483648, %v2087_v57  ;;  %vm2092_vm8 = vcmp.eq.f32.partialorder %v2087_v57, 0.0 }
 0xec1   : > { %v2580_v31 = vpop.eup %2579 }
 0xec2   : > { %v2089_v58 = vmul.f32 %v2580_v31, %v2087_v57 }
 0xec4   : > { %v2091_v60 = vsel %vm2090_vm7, %v2087_v57, %v2089_v58 }
 0xec5   : > { %v2094_v61 = vsel %vm2092_vm8, %v2093_v59, %v2091_v60 }
 0xec6   : > { %v2102_v62 = vadd.f32 1e-06, %v2094_v61 }
 0xec8   : > { %2581 = vrcp.f32 %v2102_v62 }
 0xed2   : > { %v2582_v3 = vpop.eup %2581 }
 0xed3   : > { %v2104_v5 = vmul.f32 %v2582_v3, %v2101_v2 }
 0xed5   : > { %v2111_v6 = vadd.f32 %v2267_v4, %v2104_v5 }
 0xed7   : > { %2112 = vst.msk [vmem:[%s630_s11] sm:$0xff] %vm646_vm1, %v2111_v6 }
 0xed8   : > { %2682 = shalt.err (!%p2679_p13)
}
 0xed9   : > { %s2683_s3 = scalar_lea.hbm %s3262_s5, 128  ;;  %s2687_s17 = scalar_lea.hbm %s3371_s4, 256 }
 0xeda   : > { %p2684_p6 = scmp.ne.s32.totalorder %s3262_s5, %s2683_s3  ;;  %p2688_p5 = scmp.lt.u32.totalorder %s3262_s5, %s3371_s4 }
 0xedb   : > { %p2689_p8 = scmp.lt.u32.totalorder %s2687_s17, %s2683_s3  ;;  %p2691_p0 = scmp.lt.u32.totalorder %s2683_s3, %s3262_s5 }
 0xedc   : > { %p2685_p10 = pnand %p2684_p6, %p3372_p1 }
 0xedd   : > { %p2690_p11 = por %p2689_p8, %p2688_p5 }
 0xede   : > { %p2686_p4 = pneg %p2685_p10 }
 0xedf   : > { %p2692_p3 = por %p2691_p0, %p2690_p11 }
 0xee1   : > { %p2693_p7 = pnand %p2692_p3, %p2686_p4 }
 0xee3   : > { %2696 = shalt.err (!%p2693_p7)
}
 0xee4   : > { %2494 = dma.vmem_to_hbm [thread:$0]  (%p3372_p1), %s3264_s1, 128, %s3262_s5, %s2114_s2  }
 0xee5 PF: > { %s3373_s11 = sld [smem:[#allocation12_spill]]  ;;  %s3374_s21 = sld [smem:[#allocation13_spill]] }
 0xee6   : > { %p3376_p12 = scmp.ge.s32.totalorder %s2739_s30, 2 }
 0xeeb   : > { %s2139_s13 = sand.u32 1, %s3373_s11   ;;  %p3375_p9 = scmp.ne.s32.totalorder %s3374_s21, 0 }
 0xeec   : > { %s2140_s0 = scalar_lea.sflag [#allocation4], %s2139_s13 }
 0xeed   : > { %p2508_p2 = pnand %p3376_p12, %p3375_p9 }
 0xeef   : > { %2722 = dma.done.wait (!%p2508_p2), %s2140_s0, 128  }
 0xef0   : > { %2724 = vsyncadd (!%p2508_p2), %s2140_s0, 4294967168  ;;  %p32_p13 = scmp.ge.s32.totalorder %s2958_s16, 4   ;;  %s3377_s27 = smov %s2731_s28 }
 0xef1   : > { %s3378_s28 = smov %s2735_s29  ;;  %s3379_s29 = smov %s2974_s26 }
 0xef2   : > { %s3380_s30 = smov %s2958_s16  ;;  %34 = sbr.rel (!%p32_p13) target bundleno = 19 (0x13), region = 148 }
 0xef9   :  { %2145 = vsyncpa [#allocation3], 1 }
 0xefa   :  { %2147 = vsyncpa [#allocation3 + $0x1], 1 }
 0xefb   :  { %2148 = vsyncpa [#allocation6], 1 }
 0xefc   :  { %2149 = vsyncpa [#allocation4], 1 }
 0xefd   :  { %2151 = vsyncpa [#allocation4 + $0x1], 1 }

</bundles_post_ra>
